<compile_context>
chip_gen: v7x
topology: tpu7x:2x2x1
jax: 0.10.0
libtpu: 0.0.40
codegen_flags: <defaults>
</compile_context>

<pallas_src>
from functools import partial

import numpy as np
import jax
import jax.numpy as jnp
from jax import lax
from jax.experimental import pallas as pl
from jax.experimental.pallas import tpu as pltpu


def _pixel_shuffle3d_kernel(x_ref, s_ref, o_ref, *, r, wr_dr, precision):
    # x_ref: (1, r^3, tH, W*D)   input channel-group slab (spatial minor dims flattened)
    # s_ref: (r^2, W*D, Wr*Dr)   fused 0/1 scatter matrices, one per (j, k)
    # o_ref: (1, tH, r*Wr*Dr)    lane-dense output slab; last axis = (i, w*r+j, d*r+k)
    for i in range(r):
        acc = None
        for jk in range(r * r):
            c = i * r * r + jk
            contrib = jnp.dot(x_ref[0, c], s_ref[jk],
                              precision=precision,
                              preferred_element_type=jnp.float32)
            acc = contrib if acc is None else acc + contrib
        # Static, Wr*Dr-wide (multiple of 128 for typical sizes) lane slice -> dense store.
        o_ref[0, :, i * wr_dr:(i + 1) * wr_dr] = acc.astype(o_ref.dtype)


def pixel_shuffle_3d(x, upscale_factor, *, block_budget_bytes=8 * 1024 * 1024):
    B, C, H, W, D = x.shape
    r = int(upscale_factor)
    assert C % (r ** 3) == 0, "channels must be divisible by upscale_factor**3"
    OC = C // r ** 3
    G = B * OC
    WD = W * D
    Dr = D * r
    wr_dr = WD * r * r          # Wr * Dr
    l_out = r * wr_dr           # r * Wr * Dr : lane-dense output row width
    itemsize = x.dtype.itemsize

    # --- H tile selection: biggest multiple-of-8 divisor of H (or full H) whose
    # double-buffered in+out blocks fit the block budget (keeps v7x 64 MiB VMEM happy).
    per_row = 4 * (r ** 3) * WD * itemsize        # in + out bytes, double buffered, per H row
    max_th = max(1, block_budget_bytes // per_row)
    if H <= max_th:
        tH = H
    else:
        tH = None
        t = 8
        while t <= min(H, max_th):
            if H % t == 0:
                tH = t
            t += 8
        if tH is None:
            tH = H          # cannot tile cleanly; fall back to full H
    nH = H // tH

    # --- Fused 0/1 scatter matrices: S[j*r+k][w*D+d, (w*r+j)*Dr + d*r+k] = 1.
    # Built once in numpy (glue, not hot path); total size r^4 * (W*D)^2 elements.
    # TODO(synk): for very large W*D add W-tiling so the scatter matrices stay VMEM-sized.
    S = np.zeros((r * r, WD, wr_dr), np.float32)
    w_idx = np.arange(W)[:, None]
    d_idx = np.arange(D)[None, :]
    src = (w_idx * D + d_idx).ravel()
    for j in range(r):
        for k in range(r):
            dst = ((w_idx * r + j) * Dr + d_idx * r + k).ravel()
            S[j * r + k, src, dst] = 1.0
    S = jnp.asarray(S, dtype=x.dtype)

    # Pure (contiguous) reshape -> free; gives wide contiguous DMA bursts per block.
    xg = x.reshape(G, r ** 3, H, WD)

    # HIGHEST keeps the f32 permutation exact through the MXU multi-pass path;
    # bf16/fp16 inputs are exact with the default single pass.
    precision = lax.Precision.HIGHEST if x.dtype == jnp.float32 else None

    kernel = partial(_pixel_shuffle3d_kernel, r=r, wr_dr=wr_dr, precision=precision)

    out_flat = pl.pallas_call(
        kernel,
        out_shape=jax.ShapeDtypeStruct((G, H, l_out), x.dtype),
        grid_spec=pltpu.PrefetchScalarGridSpec(
            num_scalar_prefetch=0,
            grid=(G, nH),
            in_specs=[
                pl.BlockSpec((1, r ** 3, tH, WD), lambda g, hb: (g, 0, hb, 0)),
                # Constant index map: scatter matrices DMA'd once and reused.
                pl.BlockSpec((r * r, WD, wr_dr), lambda g, hb: (0, 0, 0)),
            ],
            out_specs=pl.BlockSpec((1, tH, l_out), lambda g, hb: (g, hb, 0)),
        ),
        compiler_params=pltpu.CompilerParams(
            dimension_semantics=("parallel", "parallel"),
            vmem_limit_bytes=64 * 1024 * 1024,
        ),
    )(xg, S)

    # (G, H, r*Wr*Dr) and (B, OC, H*r, W*r, D*r) are the same contiguous bytes.
    return out_flat.reshape(B, OC, H * r, W * r, D * r)


def pixel_shuffle_3d_ref(x, r):
    # Pure-JAX reference mirroring the PyTorch view/permute/view exactly.
    B, C, H, W, D = x.shape
    oc = C // r ** 3
    y = x.reshape(B, oc, r, r, r, H, W, D)
    y = jnp.transpose(y, (0, 1, 5, 2, 6, 3, 7, 4))
    return y.reshape(B, oc, H * r, W * r, D * r)


if __name__ == "__main__":
    # PixelShuffle3D has no learnable parameters — only upscale_factor.
    r = 2
    B, OC, H, W, D = 2, 2, 8, 8, 8
    C = OC * r ** 3  # = 16

    key = jax.random.PRNGKey(0)
    x = jax.random.normal(key, (B, C, H, W, D), dtype=jnp.float32)

    out = pixel_shuffle_3d(x, r)
    out = jax.block_until_ready(out)

    ref = pixel_shuffle_3d_ref(x, r)
    assert out.shape == (B, OC, H * r, W * r, D * r)
    np.testing.assert_allclose(np.asarray(out), np.asarray(ref), rtol=1e-6, atol=1e-6)
    print("KERNEL_OK")
</pallas_src>

<mosaic_0001>
module attributes {stable_mosaic.version = 11 : i64} {
  func.func @_pixel_shuffle3d_kernel(%arg0: i32, %arg1: i32, %arg2: memref<1x8x8x64xf32, #tpu.memory_space<vmem>>, %arg3: memref<4x64x256xf32, #tpu.memory_space<vmem>>, %arg4: memref<1x8x512xf32, #tpu.memory_space<vmem>>) attributes {dimension_semantics = [#tpu.dimension_semantics<parallel>, #tpu.dimension_semantics<parallel>], iteration_bounds = array<i64: 4, 1>, scalar_prefetch = 0 : i64, scratch_operands = 0 : i64, tpu.core_type = #tpu.core_type<tc>, window_params = [{transform_indices = @transform_0, window_bounds = array<i64: 1, 8, 8, 64>}, {pipeline_mode = #tpu.pipeline_mode<synchronous>, transform_indices = @transform_1, window_bounds = array<i64: 4, 64, 256>}, {transform_indices = @transform_2, window_bounds = array<i64: 1, 8, 512>}]} {
    %c0 = arith.constant 0 : index
    %c0_0 = arith.constant 0 : index
    %c0_1 = arith.constant 0 : index
    %c0_2 = arith.constant 0 : index
    %0 = vector.load %arg2[%c0, %c0_0, %c0_1, %c0_2] : memref<1x8x8x64xf32, #tpu.memory_space<vmem>>, vector<1x1x8x64xf32>
    %1 = vector.shape_cast %0 : vector<1x1x8x64xf32> to vector<8x64xf32>
    %c0_3 = arith.constant 0 : index
    %c0_4 = arith.constant 0 : index
    %c0_5 = arith.constant 0 : index
    %2 = vector.load %arg3[%c0_3, %c0_4, %c0_5] : memref<4x64x256xf32, #tpu.memory_space<vmem>>, vector<1x64x256xf32>
    %3 = vector.shape_cast %2 : vector<1x64x256xf32> to vector<64x256xf32>
    %cst = arith.constant dense<0.000000e+00> : vector<8x256xf32>
    %4 = tpu.matmul %1, %3, %cst {dimension_numbers = #tpu.dot_dimension_numbers<[1], [0], [0], [1], [0, 0, 1, 1], [], []>, precision = #tpu.contract_precision<fp32>} : vector<8x64xf32>, vector<64x256xf32>, vector<8x256xf32> -> vector<8x256xf32>
    %c0_6 = arith.constant 0 : index
    %c1 = arith.constant 1 : index
    %c0_7 = arith.constant 0 : index
    %c0_8 = arith.constant 0 : index
    %5 = vector.load %arg2[%c0_6, %c1, %c0_7, %c0_8] : memref<1x8x8x64xf32, #tpu.memory_space<vmem>>, vector<1x1x8x64xf32>
    %6 = vector.shape_cast %5 : vector<1x1x8x64xf32> to vector<8x64xf32>
    %c1_9 = arith.constant 1 : index
    %c0_10 = arith.constant 0 : index
    %c0_11 = arith.constant 0 : index
    %7 = vector.load %arg3[%c1_9, %c0_10, %c0_11] : memref<4x64x256xf32, #tpu.memory_space<vmem>>, vector<1x64x256xf32>
    %8 = vector.shape_cast %7 : vector<1x64x256xf32> to vector<64x256xf32>
    %cst_12 = arith.constant dense<0.000000e+00> : vector<8x256xf32>
    %9 = tpu.matmul %6, %8, %cst_12 {dimension_numbers = #tpu.dot_dimension_numbers<[1], [0], [0], [1], [0, 0, 1, 1], [], []>, precision = #tpu.contract_precision<fp32>} : vector<8x64xf32>, vector<64x256xf32>, vector<8x256xf32> -> vector<8x256xf32>
    %10 = arith.addf %4, %9 : vector<8x256xf32>
    %c0_13 = arith.constant 0 : index
    %c2 = arith.constant 2 : index
    %c0_14 = arith.constant 0 : index
    %c0_15 = arith.constant 0 : index
    %11 = vector.load %arg2[%c0_13, %c2, %c0_14, %c0_15] : memref<1x8x8x64xf32, #tpu.memory_space<vmem>>, vector<1x1x8x64xf32>
    %12 = vector.shape_cast %11 : vector<1x1x8x64xf32> to vector<8x64xf32>
    %c2_16 = arith.constant 2 : index
    %c0_17 = arith.constant 0 : index
    %c0_18 = arith.constant 0 : index
    %13 = vector.load %arg3[%c2_16, %c0_17, %c0_18] : memref<4x64x256xf32, #tpu.memory_space<vmem>>, vector<1x64x256xf32>
    %14 = vector.shape_cast %13 : vector<1x64x256xf32> to vector<64x256xf32>
    %cst_19 = arith.constant dense<0.000000e+00> : vector<8x256xf32>
    %15 = tpu.matmul %12, %14, %cst_19 {dimension_numbers = #tpu.dot_dimension_numbers<[1], [0], [0], [1], [0, 0, 1, 1], [], []>, precision = #tpu.contract_precision<fp32>} : vector<8x64xf32>, vector<64x256xf32>, vector<8x256xf32> -> vector<8x256xf32>
    %16 = arith.addf %10, %15 : vector<8x256xf32>
    %c0_20 = arith.constant 0 : index
    %c3 = arith.constant 3 : index
    %c0_21 = arith.constant 0 : index
    %c0_22 = arith.constant 0 : index
    %17 = vector.load %arg2[%c0_20, %c3, %c0_21, %c0_22] : memref<1x8x8x64xf32, #tpu.memory_space<vmem>>, vector<1x1x8x64xf32>
    %18 = vector.shape_cast %17 : vector<1x1x8x64xf32> to vector<8x64xf32>
    %c3_23 = arith.constant 3 : index
    %c0_24 = arith.constant 0 : index
    %c0_25 = arith.constant 0 : index
    %19 = vector.load %arg3[%c3_23, %c0_24, %c0_25] : memref<4x64x256xf32, #tpu.memory_space<vmem>>, vector<1x64x256xf32>
    %20 = vector.shape_cast %19 : vector<1x64x256xf32> to vector<64x256xf32>
    %cst_26 = arith.constant dense<0.000000e+00> : vector<8x256xf32>
    %21 = tpu.matmul %18, %20, %cst_26 {dimension_numbers = #tpu.dot_dimension_numbers<[1], [0], [0], [1], [0, 0, 1, 1], [], []>, precision = #tpu.contract_precision<fp32>} : vector<8x64xf32>, vector<64x256xf32>, vector<8x256xf32> -> vector<8x256xf32>
    %22 = arith.addf %16, %21 : vector<8x256xf32>
    %c0_27 = arith.constant 0 : index
    %c0_28 = arith.constant 0 : index
    %c0_29 = arith.constant 0 : index
    %23 = vector.load %arg4[%c0_27, %c0_28, %c0_29] : memref<1x8x512xf32, #tpu.memory_space<vmem>>, vector<1x8x256xf32>
    %24 = vector.shape_cast %23 : vector<1x8x256xf32> to vector<8x256xf32>
    %25 = vector.shape_cast %22 : vector<8x256xf32> to vector<1x8x256xf32>
    tpu.vector_store %arg4[%c0_27, %c0_28, %c0_29], %25 {strides = array<i32>} : memref<1x8x512xf32, #tpu.memory_space<vmem>>, vector<1x8x256xf32>,
    %c0_30 = arith.constant 0 : index
    %c4 = arith.constant 4 : index
    %c0_31 = arith.constant 0 : index
    %c0_32 = arith.constant 0 : index
    %26 = vector.load %arg2[%c0_30, %c4, %c0_31, %c0_32] : memref<1x8x8x64xf32, #tpu.memory_space<vmem>>, vector<1x1x8x64xf32>
    %27 = vector.shape_cast %26 : vector<1x1x8x64xf32> to vector<8x64xf32>
    %c0_33 = arith.constant 0 : index
    %c0_34 = arith.constant 0 : index
    %c0_35 = arith.constant 0 : index
    %28 = vector.load %arg3[%c0_33, %c0_34, %c0_35] : memref<4x64x256xf32, #tpu.memory_space<vmem>>, vector<1x64x256xf32>
    %29 = vector.shape_cast %28 : vector<1x64x256xf32> to vector<64x256xf32>
    %cst_36 = arith.constant dense<0.000000e+00> : vector<8x256xf32>
    %30 = tpu.matmul %27, %29, %cst_36 {dimension_numbers = #tpu.dot_dimension_numbers<[1], [0], [0], [1], [0, 0, 1, 1], [], []>, precision = #tpu.contract_precision<fp32>} : vector<8x64xf32>, vector<64x256xf32>, vector<8x256xf32> -> vector<8x256xf32>
    %c0_37 = arith.constant 0 : index
    %c5 = arith.constant 5 : index
    %c0_38 = arith.constant 0 : index
    %c0_39 = arith.constant 0 : index
    %31 = vector.load %arg2[%c0_37, %c5, %c0_38, %c0_39] : memref<1x8x8x64xf32, #tpu.memory_space<vmem>>, vector<1x1x8x64xf32>
    %32 = vector.shape_cast %31 : vector<1x1x8x64xf32> to vector<8x64xf32>
    %c1_40 = arith.constant 1 : index
    %c0_41 = arith.constant 0 : index
    %c0_42 = arith.constant 0 : index
    %33 = vector.load %arg3[%c1_40, %c0_41, %c0_42] : memref<4x64x256xf32, #tpu.memory_space<vmem>>, vector<1x64x256xf32>
    %34 = vector.shape_cast %33 : vector<1x64x256xf32> to vector<64x256xf32>
    %cst_43 = arith.constant dense<0.000000e+00> : vector<8x256xf32>
    %35 = tpu.matmul %32, %34, %cst_43 {dimension_numbers = #tpu.dot_dimension_numbers<[1], [0], [0], [1], [0, 0, 1, 1], [], []>, precision = #tpu.contract_precision<fp32>} : vector<8x64xf32>, vector<64x256xf32>, vector<8x256xf32> -> vector<8x256xf32>
    %36 = arith.addf %30, %35 : vector<8x256xf32>
    %c0_44 = arith.constant 0 : index
    %c6 = arith.constant 6 : index
    %c0_45 = arith.constant 0 : index
    %c0_46 = arith.constant 0 : index
    %37 = vector.load %arg2[%c0_44, %c6, %c0_45, %c0_46] : memref<1x8x8x64xf32, #tpu.memory_space<vmem>>, vector<1x1x8x64xf32>
    %38 = vector.shape_cast %37 : vector<1x1x8x64xf32> to vector<8x64xf32>
    %c2_47 = arith.constant 2 : index
    %c0_48 = arith.constant 0 : index
    %c0_49 = arith.constant 0 : index
    %39 = vector.load %arg3[%c2_47, %c0_48, %c0_49] : memref<4x64x256xf32, #tpu.memory_space<vmem>>, vector<1x64x256xf32>
    %40 = vector.shape_cast %39 : vector<1x64x256xf32> to vector<64x256xf32>
    %cst_50 = arith.constant dense<0.000000e+00> : vector<8x256xf32>
    %41 = tpu.matmul %38, %40, %cst_50 {dimension_numbers = #tpu.dot_dimension_numbers<[1], [0], [0], [1], [0, 0, 1, 1], [], []>, precision = #tpu.contract_precision<fp32>} : vector<8x64xf32>, vector<64x256xf32>, vector<8x256xf32> -> vector<8x256xf32>
    %42 = arith.addf %36, %41 : vector<8x256xf32>
    %c0_51 = arith.constant 0 : index
    %c7 = arith.constant 7 : index
    %c0_52 = arith.constant 0 : index
    %c0_53 = arith.constant 0 : index
    %43 = vector.load %arg2[%c0_51, %c7, %c0_52, %c0_53] : memref<1x8x8x64xf32, #tpu.memory_space<vmem>>, vector<1x1x8x64xf32>
    %44 = vector.shape_cast %43 : vector<1x1x8x64xf32> to vector<8x64xf32>
    %c3_54 = arith.constant 3 : index
    %c0_55 = arith.constant 0 : index
    %c0_56 = arith.constant 0 : index
    %45 = vector.load %arg3[%c3_54, %c0_55, %c0_56] : memref<4x64x256xf32, #tpu.memory_space<vmem>>, vector<1x64x256xf32>
    %46 = vector.shape_cast %45 : vector<1x64x256xf32> to vector<64x256xf32>
    %cst_57 = arith.constant dense<0.000000e+00> : vector<8x256xf32>
    %47 = tpu.matmul %44, %46, %cst_57 {dimension_numbers = #tpu.dot_dimension_numbers<[1], [0], [0], [1], [0, 0, 1, 1], [], []>, precision = #tpu.contract_precision<fp32>} : vector<8x64xf32>, vector<64x256xf32>, vector<8x256xf32> -> vector<8x256xf32>
    %48 = arith.addf %42, %47 : vector<8x256xf32>
    %c0_58 = arith.constant 0 : index
    %c0_59 = arith.constant 0 : index
    %c256 = arith.constant 256 : index
    %49 = vector.load %arg4[%c0_58, %c0_59, %c256] : memref<1x8x512xf32, #tpu.memory_space<vmem>>, vector<1x8x256xf32>
    %50 = vector.shape_cast %49 : vector<1x8x256xf32> to vector<8x256xf32>
    %51 = vector.shape_cast %48 : vector<8x256xf32> to vector<1x8x256xf32>
    tpu.vector_store %arg4[%c0_58, %c0_59, %c256], %51 {strides = array<i32>} : memref<1x8x512xf32, #tpu.memory_space<vmem>>, vector<1x8x256xf32>,
    return
  }
  func.func @transform_0(%arg0: i32, %arg1: i32) -> (i32, i32, i32, i32) {
    %c0_i32 = arith.constant 0 : i32
    %c0_i32_0 = arith.constant 0 : i32
    %c0_i32_1 = arith.constant 0 : i32
    return %arg0, %c0_i32, %arg1, %c0_i32_0 : i32, i32, i32, i32
  }
  func.func @transform_1(%arg0: i32, %arg1: i32) -> (i32, i32, i32) {
    %c0_i32 = arith.constant 0 : i32
    %c0_i32_0 = arith.constant 0 : i32
    %c0_i32_1 = arith.constant 0 : i32
    %c0_i32_2 = arith.constant 0 : i32
    return %c0_i32, %c0_i32_0, %c0_i32_1 : i32, i32, i32
  }
  func.func @transform_2(%arg0: i32, %arg1: i32) -> (i32, i32, i32) {
    %c0_i32 = arith.constant 0 : i32
    %c0_i32_0 = arith.constant 0 : i32
    return %arg0, %arg1, %c0_i32 : i32, i32, i32
  }
}

</mosaic_0001>

<bundles_post_ra>
// kernel: tpu_custom_call.1
= control target key start
LH: loop header
LB: loop body
LE: loop exit
PB: predicated region body
PF: predicated region fallthrough
CT: control target
= control target key end

     0   :  { %7 = vsyncpa [#allocation3], 0  ;;  %s8030_s0 = inlined_call_operand.hbm [shape: f32[4,8,8,64], index: 0, kind: input, shape index: {}]   ;;  %s8031_s1 = inlined_call_operand.hbm [shape: f32[4,64,256], index: 1, kind: input, shape index: {}]   ;;  %s8032_s2 = inlined_call_operand.hbm [shape: f32[4,8,512], index: 2, kind: output, shape index: {}]  }
   0x1   :  { %9 = vsyncpa [#allocation3 + $0x1], 0 }
   0x2   :  { %10 = vsyncpa [#allocation6], 0 }
   0x3   :  { %11 = vsyncpa [#allocation4], 0 }
   0x4   :  { %13 = vsyncpa [#allocation4 + $0x1], 0  ;;  %s6796_s9 = smov 0   ;;  %s6798_s10 = smov 0  }
   0x5   :  { %s6800_s11 = smov 0   ;;  %s6802_s12 = smov 0  }
   0x6   :  { %s6804_s13 = smov 0   ;;  %s6806_s14 = smov 0  }
   0x7 LB: > { %s5663_s15 = sadd.s32 4294967295, %s6771_s14   ;;  %s5664_s16 = sadd.s32 4294967294, %s6771_s14   ;;  %s6771_s14 = sphi %s6806_s14, %s19_s14   ;;  %s6767_s13 = sphi %s6804_s13, %s8079_s13   ;;  %s6763_s12 = sphi %s6802_s12, %s8078_s12   ;;  %s6759_s11 = sphi %s6800_s11, %s8077_s11   ;;  %s6755_s10 = sphi %s6798_s10, %s8076_s10   ;;  %s6751_s9 = sphi %s6796_s9, %s8075_s9  }
   0x8   : > { %p53_p0 = scmp.ne.s32.totalorder %s6755_s10, %s6751_s9  ;;  %p6830_p1 = scmp.eq.s32.totalorder %s5663_s15, 0 }
   0x9   : > { %p6834_p2 = scmp.eq.s32.totalorder %s5663_s15, 3  ;;  %p106_p3 = scmp.eq.s32.totalorder %s5664_s16, 3 }
   0xa   : > { %s8049_s17 = scalar_select %p6830_p1, 1, 0 }
   0xb   : > { %s8050_s18 = scalar_select %p6834_p2, 1, 0 }
   0xc   : > { %p6840_p4 = por %p6830_p1, %p53_p0  ;;  %p5665_p5 = scmp.ge.s32.totalorder %s6771_s14, 1 }
   0xd   : > { %p6845_p6 = por %p106_p3, %p53_p0  ;;  %p113_p7 = scmp.lt.s32.totalorder %s6771_s14, 5 }
   0xe   : > { %s8051_s19 = scalar_select %p6840_p4, 1, 0 }
   0xf   : > { %s8052_s20 = scalar_select %p6845_p6, 1, 0 }
  0x10   : > { %p6850_p8 = pnand %p5665_p5, %p113_p7  ;;  %s6773_s22 = smov [#allocation5]  }
  0x11   : > { %s125_s23 = sshll.u32 %s6773_s22, 4  ;;  %s31_s25 = sadd.s32 1, %s6767_s13  ;;  %s126_s23 = int_to_ptr.vmem [resolvable:$true] %s125_s23 }
  0x12   : > { %s8053_s21 = scalar_select %p6850_p8, 1, 0 }
  0x13   : > { %p6557_p9 = pneg %p6850_p8  ;;  %s6627_s28 = scalar_lea.hbm %s8031_s1, 8192 }
  0x14   : > { %p6628_p11 = scmp.ne.s32.totalorder %s8031_s1, %s6627_s28  ;;  %p6634_p3 = scmp.lt.u32.totalorder %s6627_s28, %s8031_s1 }
  0x15   : > { %p6858_p10 = pnand %p6557_p9, %p6830_p1 }
  0x17   : > { %p6629_p12 = pneg %p6858_p10 }
  0x19   : > { %p6630_p13 = pnand %p6629_p12, %p6628_p11 }
  0x1b   : > { %p6631_p0 = pneg %p6630_p13 }
  0x1d   : > { %p6636_p5 = pnand %p6634_p3, %p6631_p0 }
  0x1f   : > { %6639 = shalt.err (!%p6636_p5)
}
  0x20   : > { %s6640_s5 = scalar_lea.vmem %s126_s23, 8192  ;;  %p6648_p1 = scmp.lt.s32.totalorder %s126_s23, %s126_s23 }
  0x21   : > { %p6641_p7 = scmp.ne.s32.totalorder %s126_s23, %s6640_s5  ;;  %p6649_p4 = scmp.lt.s32.totalorder %s6640_s5, %s6640_s5 }
  0x23   : > { %p6643_p9 = pnand %p6641_p7, %p6629_p12  ;;  %p6650_p8 = por %p6649_p4, %p6648_p1 }
  0x25   : > { %p6644_p6 = pneg %p6643_p9 }
  0x27   : > { %p6651_p2 = pnand %p6650_p8, %p6644_p6 }
  0x29   : > { %6654 = shalt.err (!%p6651_p2)
}
  0x2a   : > { %s6774_s6 = smov 256   ;;  %s6775_s7 = smov 16  }
  0x2b   : > { %6560 = dma.hbm_to_vmem [thread:$0]  (!%p6858_p10), %s8031_s1, 8192, %s126_s23, [#allocation6], %s6774_s6, %s6774_s6, %s6775_s7  }
  0x2c   : > { %p33_p1 = scmp.ge.s32.totalorder %s31_s25, 4  ;;  %s40_s16 = sadd.s32 1, %s6759_s11 }
  0x2d   : > { %p47_p2 = scmp.ne.s32.totalorder %s6759_s11, %s6755_s10  ;;  %p48_p4 = scmp.eq.s32.totalorder %s6771_s14, 0 }
  0x2e   : > { %s8081_s25 = smov (%p33_p1, %s31_s25), 0  ;;  %p8056_p8 = scmp.ne.s32.totalorder %s8050_s18, 0 }
  0x2f   : > { %p6885_p6 = por %p48_p4, %p47_p2  ;;  %s35_s24 = ssub.s32 %s6767_s13, %s8081_s25 }
  0x30   : > { %p6891_p11 = por %p8056_p8, %p47_p2  ;;  %p6570_p12 = scmp.lt.s32.totalorder %s6771_s14, 4 }
  0x31   : > { %p38_p10 = scmp.eq.s32.totalorder %s35_s24, 0  ;;  %s139_s23 = sand.u32 1, %s6759_s11  }
  0x32   : > { %s5668_s27 = sshll.u32 %s139_s23, 6  ;;  %s5687_s29 = sshll.u32 %s6767_s13, 10 }
  0x33   : > { %s6900_s28 = scalar_select %p38_p10, %s6759_s11, %s40_s16  }
  0x34   : > { %s6906_s4 = scalar_lea.hbm %s8030_s0, %s5687_s29  ;;  %s143_s18 = scalar_lea.vmem [#allocation2], %s5668_s27 }
  0x35   : > { %s151_s5 = sshll.u32 %s143_s18, 4  ;;  %p6912_p13 = pnand %p6570_p12, %p6885_p6  ;;  %s6908_s5 = int_to_ptr.vmem [resolvable:$true] %s151_s5 }
  0x36   : > { %s6916_s7 = scalar_lea.sflag [#allocation3], %s139_s23  ;;  %s6655_s8 = scalar_lea.hbm %s6906_s4, 1024 }
  0x37   : > { %p6656_p0 = scmp.ne.s32.totalorder %s6906_s4, %s6655_s8  ;;  %p6657_p3 = pneg %p6912_p13 }
  0x38   : > { %s6660_s22 = scalar_lea.hbm %s8030_s0, 4096  ;;  %p6661_p9 = scmp.lt.u32.totalorder %s6906_s4, %s8030_s0 }
  0x39   : > { %p6658_p5 = pnand %p6657_p3, %p6656_p0  ;;  %p6662_p1 = scmp.lt.u32.totalorder %s6660_s22, %s6655_s8 }
  0x3a   : > { %p6664_p4 = scmp.lt.u32.totalorder %s6655_s8, %s6906_s4 }
  0x3b   : > { %p6659_p7 = pneg %p6658_p5  ;;  %p6663_p2 = por %p6662_p1, %p6661_p9 }
  0x3d   : > { %p6665_p6 = por %p6664_p4, %p6663_p2 }
  0x3f   : > { %p6666_p8 = pnand %p6665_p6, %p6659_p7 }
  0x41   : > { %6669 = shalt.err (!%p6666_p8)
}
  0x42   : > { %s6670_s23 = scalar_lea.vmem %s6908_s5, 1024  ;;  %s6776_s29 = smov [#allocation2]  }
  0x43   : > { %p6671_p12 = scmp.ne.s32.totalorder %s6908_s5, %s6670_s23  ;;  %s6675_s30 = sshll.u32 %s6776_s29, 4  ;;  %s6676_s30 = int_to_ptr.vmem [resolvable:$false] %s6675_s30 }
  0x44   : > { %s6677_s3 = scalar_lea.vmem %s6676_s30, 2048  ;;  %p6678_p5 = scmp.lt.s32.totalorder %s6908_s5, %s6676_s30 }
  0x45   : > { %p6673_p10 = pnand %p6671_p12, %p6657_p3  ;;  %p6679_p9 = scmp.lt.s32.totalorder %s6677_s3, %s6670_s23 }
  0x47   : > { %p6674_p0 = pneg %p6673_p10  ;;  %p6680_p1 = por %p6679_p9, %p6678_p5 }
  0x49   : > { %p6681_p2 = pnand %p6680_p1, %p6674_p0 }
  0x4b   : > { %6684 = shalt.err (!%p6681_p2)
}
  0x4c   : > { %s6777_s18 = smov 128   ;;  %s6778_s8 = smov 8  }
  0x4d   : > { %6564 = dma.hbm_to_vmem [thread:$0]  (!%p6912_p13), %s6906_s4, 1024, %s6908_s5, %s6916_s7, %s6777_s18, %s6777_s18, %s6778_s8  }
  0x4e   : > { %p8059_p3 = scmp.ne.s32.totalorder %s8053_s21, 0 }
  0x4f   : > { %s6947_s15 = sand.u32 (!%p8059_p3), 1, %s6755_s10   ;;  %p8060_p7 = scmp.ne.s32.totalorder (!%p8059_p3), %s8051_s19, 0 }
  0x50   : > { %163 = sbr.rel (%p8059_p3) target bundleno = 712 (0x2c8), region = 28  ;;  %s5672_s16 = sshll.u32 (!%p8059_p3), %s6947_s15, 6 }
  0x51   : > { %s166_s22 = scalar_lea.sflag (!%p8059_p3), [#allocation3], %s6947_s15  ;;  %s6951_s24 = scalar_lea.vmem (!%p8059_p3), [#allocation2], %s5672_s16 }
  0x57   : > { %6738 = dma.done.wait (%p8060_p7), %s166_s22, 1024  }
  0x58   : > { %6740 = vsyncadd (%p8060_p7), %s166_s22, 4294966272  ;;  %p8061_p13 = scmp.ne.s32.totalorder %s8049_s17, 0 }
  0x5a   : > { %6742 = dma.done.wait (%p8061_p13), [#allocation6], 8192  }
  0x5b   : > { %6744 = vsyncadd (%p8061_p13), [#allocation6], 4294959104  ;;  %v6779_v0 = vmov 0.0   ;;  %v215_v1 = vld [vmem:[#allocation5 + $0x88] sm:$0xff]  ;;  %v217_v2 = vld [vmem:[#allocation5 + $0x98] sm:$0xff]  ;;  %vm230_vm0 = vcmask 523264  }
  0x5c   : > { %314 = vmatprep.mubr.f32.mxu0 %v6779_v0  ;;  %2994 = vmatprep.mubr.f32.mxu1 %v6779_v0  ;;  %v214_v3 = vld [vmem:[#allocation5 + $0x80] sm:$0xff]  ;;  %v234_v4 = vand.u32 4294901760, %v215_v1  ;;  %v238_v5 = vand.u32 4294901760, %v217_v2  ;;  %v216_v6 = vld [vmem:[#allocation5 + $0x90] sm:$0xff]  ;;  %v219_v8 = vld [vmem:[#allocation5 + $0xa8] sm:$0xff]  ;;  %s5674_s17 = sshll.u32 %s6947_s15, 5 }
  0x5d   : > { %v236_v7 = vand.u32 4294901760, %v214_v3  ;;  %v221_v9 = vld [vmem:[#allocation5 + $0xb8] sm:$0xff]  ;;  %v240_v10 = vand.u32 4294901760, %v216_v6  ;;  %v242_v11 = vand.u32 4294901760, %v219_v8  ;;  %v218_v13 = vld [vmem:[#allocation5 + $0xa0] sm:$0xff]  ;;  %v220_v14 = vld [vmem:[#allocation5 + $0xb0] sm:$0xff] }
  0x5e   : > { %v246_v12 = vand.u32 4294901760, %v221_v9  ;;  %v223_v15 = vld [vmem:[#allocation5 + $0xc8] sm:$0xff]  ;;  %v6963_v16 = vpack.c.bf16 %v238_v5, %v234_v4  ;;  %v6965_v17 = vsub.f32 %v215_v1, %v234_v4  ;;  %v6967_v18 = vsub.f32 %v217_v2, %v238_v5  ;;  %v225_v20 = vld [vmem:[#allocation5 + $0xd8] sm:$0xff]  ;;  %v222_v21 = vld [vmem:[#allocation5 + $0xc0] sm:$0xff]  ;;  %s193_s19 = scalar_lea.vmem [#allocation7], %s5674_s17  ;;  %s5688_s4 = sshll.u32 %s6763_s12, 9 }
  0x5f   : > { %v6969_v19 = vsub.f32 %v214_v3, %v236_v7  ;;  %v224_v22 = vld [vmem:[#allocation5 + $0xd0] sm:$0xff]  ;;  %v6971_v23 = vpack.c.bf16 %v240_v10, %v236_v7  ;;  %v6973_v24 = vsub.f32 %v216_v6, %v240_v10  ;;  %v6977_v26 = vsub.f32 %v219_v8, %v242_v11  ;;  %v227_v27 = vld [vmem:[#allocation5 + $0xe8] sm:$0xff]  ;;  %v229_v28 = vld [vmem:[#allocation5 + $0xf8] sm:$0xff]  ;;  %s5570_s21 = sshll.u32 %s193_s19, 4  ;;  %s7984_s7 = scalar_lea.hbm %s8032_s2, %s5688_s4  ;;  %s7979_s21 = int_to_ptr.vmem [resolvable:$true] %s5570_s21 }
  0x60   : > { %v6975_v25 = vpack.c.bf16 %v246_v12, %v242_v11  ;;  %5690 = vmatprep.subr.bf16.mxu0 %v6963_v16  ;;  %6074 = vmatprep.subr.bf16.mxu1 %v6963_v16  ;;  %v6981_v29 = vsub.f32 %v221_v9, %v246_v12  ;;  %v244_v30 = vand.u32 4294901760, %v218_v13  ;;  %v248_v31 = vand.u32 4294901760, %v220_v14  ;;  %v226_v41 = vld [vmem:[#allocation5 + $0xe0] sm:$0xff]  ;;  %v228_v42 = vld [vmem:[#allocation5 + $0xf0] sm:$0xff]  ;;  %v5675_v47 = vld [vmem:[%s6951_s24 + $0x8] sm:$0xff]  ;;  %s5554_s27 = scalar_lea.sflag [#allocation4], %s6947_s15 }
  0x61   : > { %v250_v32 = vand.u32 4294901760, %v223_v15  ;;  %5692 = vmatpush1.bf16.msra.mxu0 %v6971_v23  ;;  %6076 = vmatpush1.bf16.msra.mxu1 %v6971_v23  ;;  %v254_v33 = vand.u32 4294901760, %v225_v20  ;;  %v252_v34 = vand.u32 4294901760, %v222_v21  ;;  %v256_v35 = vand.u32 4294901760, %v224_v22  ;;  %v5679_v60 = vld [vmem:[%s6951_s24 + $0x28] sm:$0xff]  ;;  %s6685_s23 = scalar_lea.vmem %s7979_s21, 512 }
  0x62   : > { %v258_v36 = vand.u32 4294901760, %v227_v27  ;;  %5694 = vmatprep.subr.bf16.mxu0 %v6975_v25  ;;  %6078 = vmatprep.subr.bf16.mxu1 %v6975_v25  ;;  %v6987_v37 = vpack.c.bf16 %v248_v31, %v244_v30  ;;  %v6989_v38 = vsub.f32 %v218_v13, %v244_v30  ;;  %v6991_v39 = vsub.f32 %v220_v14, %v248_v31  ;;  %p6686_p4 = scmp.ne.s32.totalorder %s7979_s21, %s6685_s23  ;;  %s6780_s12 = smov [#allocation7]  }
  0x63   : > { %v262_v40 = vand.u32 4294901760, %v229_v28  ;;  %v6993_v43 = vpack.c.bf16 %v254_v33, %v250_v32  ;;  %v6995_v44 = vsub.f32 %v223_v15, %v250_v32  ;;  %v6997_v45 = vsub.f32 %v225_v20, %v254_v33  ;;  %s6689_s29 = sshll.u32 %s6780_s12, 4  ;;  %s6690_s29 = int_to_ptr.vmem [resolvable:$false] %s6689_s29 }
  0x64   : > { %v6999_v46 = vpack.c.bf16 %v256_v35, %v252_v34  ;;  %v7002_v48 = vsub.f32 %v222_v21, %v252_v34  ;;  %v7004_v49 = vsub.f32 %v224_v22, %v256_v35  ;;  %v7008_v51 = vsub.f32 %v227_v27, %v258_v36  ;;  %p6687_p6 = pnand %p6686_p4, %p6891_p11  ;;  %s6691_s30 = scalar_lea.vmem %s6690_s29, 1024 }
  0x65   : > { %v7006_v50 = vpack.c.bf16 %v262_v40, %v258_v36  ;;  %5696 = vmatpush1.bf16.msra.mxu0 %v6987_v37  ;;  %6080 = vmatpush1.bf16.msra.mxu1 %v6987_v37  ;;  %v7012_v52 = vsub.f32 %v229_v28, %v262_v40  ;;  %v260_v53 = vand.u32 4294901760, %v226_v41  ;;  %v264_v54 = vand.u32 4294901760, %v228_v42  ;;  %p6692_p12 = scmp.lt.s32.totalorder %s7979_s21, %s6690_s29  ;;  %p6693_p10 = scmp.lt.s32.totalorder %s6691_s30, %s6685_s23 }
  0x66   : > { %v328_v55 = vand.u32 4294901760, %v6965_v17  ;;  %5698 = vmatprep.subr.bf16.mxu0 %v6993_v43  ;;  %6082 = vmatprep.subr.bf16.mxu1 %v6993_v43  ;;  %v340_v56 = vand.u32 4294901760, %v6967_v18  ;;  %v232_v57 = vsel %vm230_vm0, %v5675_v47, 0  ;;  %v334_v58 = vand.u32 4294901760, %v6969_v19  ;;  %p6688_p8 = pneg %p6687_p6 }
  0x67   : > { %v346_v59 = vand.u32 4294901760, %v6973_v24  ;;  %v7022_v61 = vpack.c.bf16 %v264_v54, %v260_v53  ;;  %v7024_v62 = vsub.f32 %v226_v41, %v260_v53  ;;  %v7026_v63 = vsub.f32 %v228_v42, %v264_v54  ;;  %p6694_p0 = por %p6693_p10, %p6692_p12 }
  0x68   : > { %v329_v1 = vsub.f32 %v6965_v17, %v328_v55  ;;  %v341_v2 = vsub.f32 %v6967_v18, %v340_v56  ;;  %v7034_v3 = vand.u32 4294901760, %v232_v57  ;;  %v335_v4 = vsub.f32 %v6969_v19, %v334_v58 }
  0x69   : > { %v347_v5 = vsub.f32 %v6973_v24, %v346_v59  ;;  %5700 = vmatpush1.bf16.msra.mxu0 %v6999_v46  ;;  %6084 = vmatpush1.bf16.msra.mxu1 %v6999_v46  ;;  %v2912_v7 = vsel %vm230_vm0, %v5679_v60, 0  ;;  %v352_v8 = vand.u32 4294901760, %v6977_v26  ;;  %v364_v9 = vand.u32 4294901760, %v6981_v29  ;;  %p6695_p5 = pnand %p6694_p0, %p6688_p8 }
  0x6a   : > { %v330_v6 = vand.u32 4294901760, %v329_v1  ;;  %5702 = vmatprep.subr.bf16.mxu0 %v7006_v50  ;;  %6086 = vmatprep.subr.bf16.mxu1 %v7006_v50  ;;  %v342_v10 = vand.u32 4294901760, %v341_v2  ;;  %v7050_v11 = vsub.f32 %v232_v57, %v7034_v3  ;;  %v336_v12 = vand.u32 4294901760, %v335_v4 }
  0x6b   : > { %v348_v13 = vand.u32 4294901760, %v347_v5  ;;  %v7052_v14 = vand.u32 4294901760, %v2912_v7  ;;  %v353_v15 = vsub.f32 %v6977_v26, %v352_v8  ;;  %v365_v20 = vsub.f32 %v6981_v29, %v364_v9 }
  0x6c   : > { %v358_v21 = vand.u32 4294901760, %v6989_v38  ;;  %v5705_v22 = vpack.c.bf16 %v342_v10, %v330_v6  ;;  %v317_v27 = vand.u32 4294901760, %v7050_v11  ;;  %v370_v30 = vand.u32 4294901760, %v6991_v39 }
  0x6d   : > { %v5707_v28 = vpack.c.bf16 %v348_v13, %v336_v12  ;;  %5704 = vmatpush1.bf16.msra.mxu0 %v7022_v61  ;;  %6088 = vmatpush1.bf16.msra.mxu1 %v7022_v61  ;;  %v7066_v31 = vsub.f32 %v2912_v7, %v7052_v14  ;;  %v354_v32 = vand.u32 4294901760, %v353_v15  ;;  %v366_v33 = vand.u32 4294901760, %v365_v20 }
  0x6e   : > { %v359_v34 = vsub.f32 %v6989_v38, %v358_v21  ;;  %5706 = vmatprep.subr.bf16.mxu0 %v5705_v22  ;;  %6090 = vmatprep.subr.bf16.mxu1 %v5705_v22  ;;  %v318_v35 = vsub.f32 %v7050_v11, %v317_v27  ;;  %v371_v36 = vsub.f32 %v6991_v39, %v370_v30  ;;  %v376_v40 = vand.u32 4294901760, %v6995_v44 }
  0x6f   : > { %v388_v41 = vand.u32 4294901760, %v6997_v45  ;;  %v2997_v42 = vand.u32 4294901760, %v7066_v31  ;;  %v5709_v47 = vpack.c.bf16 %v366_v33, %v354_v32  ;;  %v382_v54 = vand.u32 4294901760, %v7002_v48 }
  0x70   : > { %v360_v53 = vand.u32 4294901760, %v359_v34  ;;  %v319_v57 = vand.u32 4294901760, %v318_v35  ;;  %v372_v60 = vand.u32 4294901760, %v371_v36  ;;  %v377_v1 = vsub.f32 %v6995_v44, %v376_v40 }
  0x71   : > { %v389_v2 = vsub.f32 %v6997_v45, %v388_v41  ;;  %v2998_v4 = vsub.f32 %v7066_v31, %v2997_v42  ;;  %v383_v5 = vsub.f32 %v7002_v48, %v382_v54  ;;  %v394_v6 = vand.u32 4294901760, %v7004_v49 }
  0x72   : > { %v400_v7 = vand.u32 4294901760, %v7008_v51  ;;  %320 = vmatmul.mubr.f32.vlgmr.msra.gmra.mrb[0].mxu0 %v319_v57  ;;  %v5711_v10 = vpack.c.bf16 %v372_v60, %v360_v53  ;;  %v378_v12 = vand.u32 4294901760, %v377_v1  ;;  %v412_v15 = vand.u32 4294901760, %v7012_v52 }
  0x73   : > { %v390_v13 = vand.u32 4294901760, %v389_v2  ;;  %5708 = vmatpush1.bf16.msra.mxu0 %v5707_v28  ;;  %v2999_v20 = vand.u32 4294901760, %v2998_v4  ;;  %v384_v22 = vand.u32 4294901760, %v383_v5  ;;  %v395_v32 = vsub.f32 %v7004_v49, %v394_v6  ;;  %470 = vmatprep.mubr.f32.mxu0 %v6779_v0 }
  0x74   : > { %v401_v33 = vsub.f32 %v7008_v51, %v400_v7  ;;  %5710 = vmatprep.subr.bf16.mxu0 %v5709_v47  ;;  %v413_v35 = vsub.f32 %v7012_v52, %v412_v15  ;;  %v406_v36 = vand.u32 4294901760, %v7024_v62  ;;  %v418_v53 = vand.u32 4294901760, %v7026_v63 }
  0x75   : > { %v5713_v34 = vpack.c.bf16 %v390_v13, %v378_v12  ;;  %3000 = vmatmul.mubr.f32.vlgmr.msra.gmra.mrb[0].mxu1 %v2999_v20  ;;  %v396_v57 = vand.u32 4294901760, %v395_v32  ;;  %v5721_v32 = vpack.c.bf16 %v6967_v18, %v6965_v17  ;;  %v5757_v17 = vpack.c.bf16 %v364_v9, %v352_v8  ;;  %v206_v8 = vld [vmem:[#allocation5 + $0x58] sm:$0xff] }
  0x76   : > { %v402_v60 = vand.u32 4294901760, %v401_v33  ;;  %6092 = vmatpush1.bf16.msra.mxu1 %v5707_v28  ;;  %v414_v1 = vand.u32 4294901760, %v413_v35  ;;  %v407_v2 = vsub.f32 %v7024_v62, %v406_v36  ;;  %v419_v4 = vsub.f32 %v7026_v63, %v418_v53  ;;  %3150 = vmatprep.mubr.f32.mxu1 %v6779_v0 }
  0x77   : > { %6094 = vmatprep.subr.bf16.mxu1 %v5709_v47  ;;  %5712 = vmatpush1.bf16.msra.mxu0 %v5711_v10  ;;  %v5715_v5 = vpack.c.bf16 %v396_v57, %v384_v22  ;;  %v5723_v47 = vpack.c.bf16 %v6973_v24, %v6969_v19  ;;  %v5725_v22 = vpack.c.bf16 %v6981_v29, %v6977_v26 }
  0x78   : > { %5714 = vmatprep.subr.bf16.mxu0 %v5713_v34  ;;  %v5717_v12 = vpack.c.bf16 %v414_v1, %v402_v60  ;;  %v408_v13 = vand.u32 4294901760, %v407_v2  ;;  %v420_v20 = vand.u32 4294901760, %v419_v4  ;;  %v5729_v33 = vpack.c.bf16 %v6997_v45, %v6995_v44  ;;  %v195_v44 = vld [vmem:[#allocation5] sm:$0xff]  ;;  %v197_v45 = vld [vmem:[#allocation5 + $0x10] sm:$0xff]  ;;  %v210_v2 = vld [vmem:[#allocation5 + $0x78] sm:$0xff] }
  0x79   : > { %v5733_v35 = vpack.c.bf16 %v7012_v52, %v7008_v51  ;;  %v5735_v57 = vpack.c.bf16 %v7026_v63, %v7024_v62  ;;  %v5753_v60 = vpack.c.bf16 %v340_v56, %v328_v55  ;;  %v5755_v1 = vpack.c.bf16 %v346_v59, %v334_v58  ;;  %v202_v51 = vld [vmem:[#allocation5 + $0x38] sm:$0xff]  ;;  %v199_v56 = vld [vmem:[#allocation5 + $0x20] sm:$0xff]  ;;  %v201_v58 = vld [vmem:[#allocation5 + $0x30] sm:$0xff] }
  0x7a   : > { %6096 = vmatpush1.bf16.msra.mxu1 %v5711_v10  ;;  %v5719_v28 = vpack.c.bf16 %v420_v20, %v408_v13  ;;  %v5727_v10 = vpack.c.bf16 %v6991_v39, %v6989_v38  ;;  %v5759_v18 = vpack.c.bf16 %v370_v30, %v358_v21  ;;  %v5761_v19 = vpack.c.bf16 %v388_v41, %v376_v40  ;;  %v196_v38 = vld [vmem:[#allocation5 + $0x8] sm:$0xff]  ;;  %v198_v39 = vld [vmem:[#allocation5 + $0x18] sm:$0xff]  ;;  %v194_v59 = vld [vmem:[%s6951_s24] sm:$0xff] }
  0x7b   : > { %6098 = vmatprep.subr.bf16.mxu1 %v5713_v34  ;;  %5716 = vmatpush1.bf16.msra.mxu0 %v5715_v5  ;;  %v5731_v34 = vpack.c.bf16 %v7004_v49, %v7002_v48  ;;  %v5763_v24 = vpack.c.bf16 %v394_v6, %v382_v54  ;;  %v5765_v26 = vpack.c.bf16 %v412_v15, %v400_v7  ;;  %v884_v48 = vand.u32 4294901760, %v196_v38  ;;  %v204_v63 = vld [vmem:[#allocation5 + $0x48] sm:$0xff]  ;;  %v203_v30 = vld [vmem:[#allocation5 + $0x40] sm:$0xff]  ;;  %v205_v6 = vld [vmem:[#allocation5 + $0x50] sm:$0xff] }
  0x7c   : > { %5718 = vmatprep.subr.bf16.mxu0 %v5717_v12  ;;  %v5767_v29 = vpack.c.bf16 %v418_v53, %v406_v36  ;;  %v888_v49 = vand.u32 4294901760, %v198_v39  ;;  %v886_v52 = vand.u32 4294901760, %v195_v44  ;;  %v890_v55 = vand.u32 4294901760, %v197_v45  ;;  %v5678_v40 = vld [vmem:[%s6951_s24 + $0x20] sm:$0xff]  ;;  %v208_v53 = vld [vmem:[#allocation5 + $0x68] sm:$0xff] }
  0x7d   : > { %v894_v21 = vand.u32 4294901760, %v199_v56  ;;  %v904_v54 = vand.u32 4294901760, %v206_v8  ;;  %v3562_v13 = vsel %vm230_vm0, %v5678_v40, 0 }
  0x7e   : > { %6100 = vmatpush1.bf16.msra.mxu1 %v5715_v5  ;;  %v7207_v9 = vpack.c.bf16 %v888_v49, %v884_v48  ;;  %v7218_v41 = vpack.c.bf16 %v890_v55, %v886_v52  ;;  %v902_v5 = vand.u32 4294901760, %v203_v30 }
  0x7f   : > { %6102 = vmatprep.subr.bf16.mxu1 %v5717_v12  ;;  %5720 = vmatpush1.bf16.msra.mxu0 %v5719_v28  ;;  %v7231_v4 = vsub.f32 %v199_v56, %v894_v21 }
  0x80   : > { %5722 = vmatprep.subr.bf16.mxu0 %v5721_v32 }
  0x82   : > { %6104 = vmatpush1.bf16.msra.mxu1 %v5719_v28  ;;  %472 = vmatmul.mubr.f32.vlgmr.msra.gmra.mrb[0].mxu0 %v7034_v3  ;;  %v906_v28 = vand.u32 4294901760, %v205_v6 }
  0x83   : > { %6106 = vmatprep.subr.bf16.mxu1 %v5721_v32  ;;  %5724 = vmatpush1.bf16.msra.mxu0 %v5723_v47 }
  0x84   : > { %5726 = vmatprep.subr.bf16.mxu0 %v5725_v22  ;;  %574 = vmatprep.mubr.f32.mxu0 %v6779_v0 }
  0x85   : > { %3152 = vmatmul.mubr.f32.vlgmr.msra.gmra.mrb[0].mxu1 %v7052_v14 }
  0x86   : > { %6108 = vmatpush1.bf16.msra.mxu1 %v5723_v47  ;;  %3254 = vmatprep.mubr.f32.mxu1 %v6779_v0 }
  0x87   : > { %6110 = vmatprep.subr.bf16.mxu1 %v5725_v22  ;;  %5728 = vmatpush1.bf16.msra.mxu0 %v5727_v10 }
  0x88   : > { %5730 = vmatprep.subr.bf16.mxu0 %v5729_v33 }
  0x8a   : > { %6112 = vmatpush1.bf16.msra.mxu1 %v5727_v10  ;;  %v908_v10 = vand.u32 4294901760, %v208_v53 }
  0x8b   : > { %6114 = vmatprep.subr.bf16.mxu1 %v5729_v33  ;;  %5732 = vmatpush1.bf16.msra.mxu0 %v5731_v34  ;;  %v912_v33 = vand.u32 4294901760, %v210_v2 }
  0x8c   : > { %5734 = vmatprep.subr.bf16.mxu0 %v5733_v35 }
  0x8e   : > { %6116 = vmatpush1.bf16.msra.mxu1 %v5731_v34  ;;  %v207_v34 = vld [vmem:[#allocation5 + $0x60] sm:$0xff] }
  0x8f   : > { %6118 = vmatprep.subr.bf16.mxu1 %v5733_v35  ;;  %5736 = vmatpush1.bf16.msra.mxu0 %v5735_v57  ;;  %v209_v35 = vld [vmem:[#allocation5 + $0x70] sm:$0xff] }
  0x90   : > { %5738 = vmatprep.subr.bf16.mxu0 %v6963_v16 }
  0x92   : > { %6120 = vmatpush1.bf16.msra.mxu1 %v5735_v57  ;;  %577 = vmatmul.mubr.f32.vlgmr.msra.gmra.mrb[0].mxu0 %v7050_v11  ;;  %v7209_v11 = vsub.f32 %v196_v38, %v884_v48  ;;  %v7273_v38 = vsub.f32 %v203_v30, %v902_v5 }
  0x93   : > { %6122 = vmatprep.subr.bf16.mxu1 %v6963_v16  ;;  %5740 = vmatpush1.bf16.msra.mxu0 %v6971_v23 }
  0x94   : > { %5742 = vmatprep.subr.bf16.mxu0 %v6975_v25  ;;  %663 = vmatprep.mubr.f32.mxu0 %v6779_v0  ;;  %v978_v32 = vand.u32 4294901760, %v7209_v11 }
  0x95   : > { %3257 = vmatmul.mubr.f32.vlgmr.msra.gmra.mrb[0].mxu1 %v7066_v31  ;;  %v882_v31 = vsel %vm230_vm0, %v194_v59, 0  ;;  %v7305_v59 = vsub.f32 %v210_v2, %v912_v33 }
  0x96   : > { %6124 = vmatpush1.bf16.msra.mxu1 %v6971_v23  ;;  %3343 = vmatprep.mubr.f32.mxu1 %v6779_v0  ;;  %v7233_v12 = vand.u32 4294901760, %v882_v31 }
  0x97   : > { %6126 = vmatprep.subr.bf16.mxu1 %v6975_v25  ;;  %5744 = vmatpush1.bf16.msra.mxu0 %v6987_v37 }
  0x98   : > { %5746 = vmatprep.subr.bf16.mxu0 %v6993_v43 }
  0x9a   : > { %6128 = vmatpush1.bf16.msra.mxu1 %v6987_v37 }
  0x9b   : > { %6130 = vmatprep.subr.bf16.mxu1 %v6993_v43  ;;  %5748 = vmatpush1.bf16.msra.mxu0 %v6999_v46 }
  0x9c   : > { %5750 = vmatprep.subr.bf16.mxu0 %v7006_v50 }
  0x9e   : > { %6132 = vmatpush1.bf16.msra.mxu1 %v6999_v46 }
  0x9f   : > { %6134 = vmatprep.subr.bf16.mxu1 %v7006_v50  ;;  %5752 = vmatpush1.bf16.msra.mxu0 %v7022_v61 }
  0xa0   : > { %5754 = vmatprep.subr.bf16.mxu0 %v5753_v60 }
  0xa2   : > { %6136 = vmatpush1.bf16.msra.mxu1 %v7022_v61  ;;  %667 = vmatmul.mubr.f32.vlgmr.msra.gmra.mrb[0].mxu0 %v317_v27  ;;  %v898_v27 = vand.u32 4294901760, %v201_v58 }
  0xa3   : > { %6138 = vmatprep.subr.bf16.mxu1 %v5753_v60  ;;  %5756 = vmatpush1.bf16.msra.mxu0 %v5755_v1  ;;  %v7249_v60 = vand.u32 4294901760, %v3562_v13 }
  0xa4   : > { %5758 = vmatprep.subr.bf16.mxu0 %v5757_v17  ;;  %785 = vmatprep.mubr.f32.mxu0 %v6779_v0  ;;  %v7238_v20 = vpack.c.bf16 %v898_v27, %v894_v21 }
  0xa5   : > { %3347 = vmatmul.mubr.f32.vlgmr.msra.gmra.mrb[0].mxu1 %v2997_v42  ;;  %v900_v42 = vand.u32 4294901760, %v204_v63 }
  0xa6   : > { %6140 = vmatpush1.bf16.msra.mxu1 %v5755_v1  ;;  %3465 = vmatprep.mubr.f32.mxu1 %v6779_v0 }
  0xa7   : > { %6142 = vmatprep.subr.bf16.mxu1 %v5757_v17  ;;  %5760 = vmatpush1.bf16.msra.mxu0 %v5759_v18  ;;  %v7245_v22 = vpack.c.bf16 %v904_v54, %v900_v42  ;;  %v7254_v17 = vsub.f32 %v204_v63, %v900_v42 }
  0xa8   : > { %5762 = vmatprep.subr.bf16.mxu0 %v5761_v19 }
  0xa9   : > { %v1026_v21 = vand.u32 4294901760, %v7254_v17 }
  0xaa   : > { %6144 = vmatpush1.bf16.msra.mxu1 %v5759_v18  ;;  %v7256_v18 = vsub.f32 %v206_v8, %v904_v54 }
  0xab   : > { %6146 = vmatprep.subr.bf16.mxu1 %v5761_v19  ;;  %5764 = vmatpush1.bf16.msra.mxu0 %v5763_v24  ;;  %v7259_v19 = vsub.f32 %v882_v31, %v7233_v12 }
  0xac   : > { %5766 = vmatprep.subr.bf16.mxu0 %v5765_v26 }
  0xae   : > { %6148 = vmatpush1.bf16.msra.mxu1 %v5763_v24 }
  0xaf   : > { %6150 = vmatprep.subr.bf16.mxu1 %v5765_v26  ;;  %5768 = vmatpush1.bf16.msra.mxu0 %v5767_v29  ;;  %v7264_v26 = vpack.c.bf16 %v906_v28, %v902_v5 }
  0xb0   : > { %5770 = vmatprep.subr.bf16.mxu0 %v6963_v16 }
  0xb2   : > { %6152 = vmatpush1.bf16.msra.mxu1 %v5767_v29  ;;  %787 = vmatmul.mubr.f32.vlgmr.msra.gmra.mrb[0].mxu0 %v7034_v3  ;;  %v910_v29 = vand.u32 4294901760, %v207_v34 }
  0xb3   : > { %6154 = vmatprep.subr.bf16.mxu1 %v6963_v16  ;;  %5772 = vmatpush1.bf16.msra.mxu0 %v6971_v23  ;;  %v200_v16 = vld [vmem:[#allocation5 + $0x28] sm:$0xff] }
  0xb4   : > { %5774 = vmatprep.subr.bf16.mxu0 %v6975_v25  ;;  %873 = vmatprep.mubr.f32.mxu0 %v6779_v0  ;;  %v892_v62 = vand.u32 4294901760, %v200_v16  ;;  %v7310_v8 = vsub.f32 %v207_v34, %v910_v29 }
  0xb5   : > { %3467 = vmatmul.mubr.f32.vlgmr.msra.gmra.mrb[0].mxu1 %v7052_v14 }
  0xb6   : > { %6156 = vmatpush1.bf16.msra.mxu1 %v6971_v23  ;;  %3553 = vmatprep.mubr.f32.mxu1 %v6779_v0  ;;  %v896_v23 = vand.u32 4294901760, %v202_v51  ;;  %v7226_v15 = vsub.f32 %v200_v16, %v892_v62  ;;  %v7288_v16 = vsub.f32 %v3562_v13, %v7249_v60 }
  0xb7   : > { %6158 = vmatprep.subr.bf16.mxu1 %v6975_v25  ;;  %5776 = vmatpush1.bf16.msra.mxu0 %v6987_v37  ;;  %v7213_v25 = vsub.f32 %v198_v39, %v888_v49  ;;  %v7275_v39 = vsub.f32 %v205_v6, %v906_v28  ;;  %v8038_v28 = vand.u32 4294901760, %v7273_v38 }
  0xb8   : > { %5778 = vmatprep.subr.bf16.mxu0 %v6993_v43  ;;  %v7224_v7 = vpack.c.bf16 %v896_v23, %v892_v62  ;;  %v7228_v36 = vsub.f32 %v202_v51, %v896_v23  ;;  %v1002_v1 = vand.u32 4294901760, %v7226_v15  ;;  %v3647_v40 = vand.u32 4294901760, %v7288_v16 }
  0xb9   : > { %v990_v47 = vand.u32 4294901760, %v7213_v25 }
  0xba   : > { %6160 = vmatpush1.bf16.msra.mxu1 %v6987_v37  ;;  %v7220_v37 = vsub.f32 %v195_v44, %v886_v52  ;;  %v1014_v24 = vand.u32 4294901760, %v7228_v36  ;;  %v7277_v44 = vpack.c.bf16 %v912_v33, %v908_v10  ;;  %v1003_v51 = vsub.f32 %v7226_v15, %v1002_v1 }
  0xbb   : > { %6162 = vmatprep.subr.bf16.mxu1 %v6993_v43  ;;  %5780 = vmatpush1.bf16.msra.mxu0 %v6999_v46  ;;  %v7222_v43 = vsub.f32 %v197_v45, %v890_v55  ;;  %v914_v45 = vand.u32 4294901760, %v209_v35  ;;  %v1008_v55 = vand.u32 4294901760, %v7231_v4  ;;  %v1027_v33 = vsub.f32 %v7254_v17, %v1026_v21 }
  0xbc   : > { %5782 = vmatprep.subr.bf16.mxu0 %v7006_v50  ;;  %v1015_v52 = vsub.f32 %v7228_v36, %v1014_v24  ;;  %v1004_v42 = vand.u32 4294901760, %v1003_v51 }
  0xbd   : > { %v996_v57 = vand.u32 4294901760, %v7222_v43  ;;  %v7308_v63 = vpack.c.bf16 %v914_v45, %v910_v29  ;;  %v7327_v5 = vsub.f32 %v209_v35, %v914_v45  ;;  %v8040_v35 = vand.u32 4294901760, %v7305_v59 }
  0xbe   : > { %6164 = vmatpush1.bf16.msra.mxu1 %v6999_v46  ;;  %v7243_v46 = vsub.f32 %v201_v58, %v898_v27  ;;  %v7303_v58 = vsub.f32 %v208_v53, %v908_v10  ;;  %v1038_v27 = vand.u32 4294901760, %v7256_v18  ;;  %v1016_v6 = vand.u32 4294901760, %v1015_v52 }
  0xbf   : > { %6166 = vmatprep.subr.bf16.mxu1 %v7006_v50  ;;  %5784 = vmatpush1.bf16.msra.mxu0 %v7022_v61  ;;  %v984_v50 = vand.u32 4294901760, %v7220_v37  ;;  %v997_v49 = vsub.f32 %v7222_v43, %v996_v57  ;;  %v1009_v53 = vsub.f32 %v7231_v4, %v1008_v55  ;;  %v8037_v10 = vand.u32 4294901760, %v7275_v39 }
  0xc0   : > { %5786 = vmatprep.subr.bf16.mxu0 %v7207_v9  ;;  %v1020_v56 = vand.u32 4294901760, %v7243_v46  ;;  %v1039_v34 = vsub.f32 %v7256_v18, %v1038_v27  ;;  %v8039_v29 = vand.u32 4294901760, %v7303_v58  ;;  %v1033_v52 = vsub.f32 %v7273_v38, %v8038_v28 }
  0xc1   : > { %v985_v48 = vsub.f32 %v7220_v37, %v984_v50  ;;  %v998_v31 = vand.u32 4294901760, %v997_v49  ;;  %v1010_v49 = vand.u32 4294901760, %v1009_v53 }
  0xc2   : > { %6168 = vmatpush1.bf16.msra.mxu1 %v7022_v61  ;;  %875 = vmatmul.mubr.f32.vlgmr.msra.gmra.mrb[0].mxu0 %v7034_v3  ;;  %v979_v61 = vsub.f32 %v7209_v11, %v978_v32  ;;  %v991_v3 = vsub.f32 %v7213_v25, %v990_v47  ;;  %v1021_v2 = vsub.f32 %v7243_v46, %v1020_v56 }
  0xc3   : > { %6170 = vmatprep.subr.bf16.mxu1 %v7207_v9  ;;  %5788 = vmatpush1.bf16.msra.mxu0 %v7218_v41  ;;  %v986_v30 = vand.u32 4294901760, %v985_v48  ;;  %v5805_v48 = vpack.c.bf16 %v1016_v6, %v1004_v42  ;;  %v1040_v42 = vand.u32 4294901760, %v1039_v34  ;;  %v1063_v6 = vsub.f32 %v7305_v59, %v8040_v35 }
  0xc4   : > { %5790 = vmatprep.subr.bf16.mxu0 %v7224_v7  ;;  %964 = vmatprep.mubr.f32.mxu0 %v6779_v0  ;;  %v980_v62 = vand.u32 4294901760, %v979_v61  ;;  %v992_v23 = vand.u32 4294901760, %v991_v3  ;;  %v3648_v3 = vsub.f32 %v7288_v16, %v3647_v40  ;;  %v1022_v51 = vand.u32 4294901760, %v1021_v2 }
  0xc5   : > { %3555 = vmatmul.mubr.f32.vlgmr.msra.gmra.mrb[0].mxu1 %v7052_v14  ;;  %v967_v14 = vand.u32 4294901760, %v7259_v19  ;;  %v5803_v61 = vpack.c.bf16 %v998_v31, %v986_v30  ;;  %v1068_v30 = vand.u32 4294901760, %v7327_v5  ;;  %v1028_v31 = vand.u32 4294901760, %v1027_v33 }
  0xc6   : > { %6172 = vmatpush1.bf16.msra.mxu1 %v7218_v41  ;;  %3644 = vmatprep.mubr.f32.mxu1 %v6779_v0  ;;  %v5801_v13 = vpack.c.bf16 %v992_v23, %v980_v62  ;;  %v1045_v62 = vsub.f32 %v7275_v39, %v8037_v10  ;;  %v1056_v23 = vand.u32 4294901760, %v7310_v8  ;;  %v3649_v53 = vand.u32 4294901760, %v3648_v3 }
  0xc7   : > { %6174 = vmatprep.subr.bf16.mxu1 %v7224_v7  ;;  %5792 = vmatpush1.bf16.msra.mxu0 %v7238_v20  ;;  %v968_v54 = vsub.f32 %v7259_v19, %v967_v14  ;;  %v5807_v2 = vpack.c.bf16 %v1022_v51, %v1010_v49  ;;  %v1034_v10 = vand.u32 4294901760, %v1033_v52  ;;  %v1069_v34 = vsub.f32 %v7327_v5, %v1068_v30 }
  0xc8   : > { %5794 = vmatprep.subr.bf16.mxu0 %v7245_v22  ;;  %v1046_v28 = vand.u32 4294901760, %v1045_v62  ;;  %v1057_v33 = vsub.f32 %v7310_v8, %v1056_v23  ;;  %v1064_v3 = vand.u32 4294901760, %v1063_v6  ;;  %v5817_v62 = vpack.c.bf16 %v7213_v25, %v7209_v11  ;;  %v1544_v6 = vld [vmem:[#allocation5 + $0x150] sm:$0xff] }
  0xc9   : > { %v969_v45 = vand.u32 4294901760, %v968_v54  ;;  %v1051_v54 = vsub.f32 %v7303_v58, %v8039_v29  ;;  %v5809_v29 = vpack.c.bf16 %v1040_v42, %v1028_v31  ;;  %v1070_v49 = vand.u32 4294901760, %v1069_v34 }
  0xca   : > { %6176 = vmatpush1.bf16.msra.mxu1 %v7238_v20  ;;  %v5831_v31 = vpack.c.bf16 %v7327_v5, %v7310_v8  ;;  %v5849_v42 = vpack.c.bf16 %v990_v47, %v978_v32  ;;  %v5853_v11 = vpack.c.bf16 %v1014_v24, %v1002_v1  ;;  %v5855_v25 = vpack.c.bf16 %v1020_v56, %v1008_v55  ;;  %v1534_v1 = vld [vmem:[#allocation5 + $0x100] sm:$0xff]  ;;  %v1541_v24 = vld [vmem:[#allocation5 + $0x138] sm:$0xff]  ;;  %v5676_v55 = vld [vmem:[%s6951_s24 + $0x10] sm:$0xff] }
  0xcb   : > { %6178 = vmatprep.subr.bf16.mxu1 %v7245_v22  ;;  %5796 = vmatpush1.bf16.msra.mxu0 %v7264_v26  ;;  %v1052_v35 = vand.u32 4294901760, %v1051_v54  ;;  %v5851_v54 = vpack.c.bf16 %v996_v57, %v984_v50  ;;  %v8065_v32 = vand.u32 4294901760, %v7305_v59  ;;  %v1535_v50 = vld [vmem:[#allocation5 + $0x108] sm:$0xff]  ;;  %v1537_v57 = vld [vmem:[#allocation5 + $0x118] sm:$0xff] }
  0xcc   : > { %5798 = vmatprep.subr.bf16.mxu0 %v7277_v44 }
  0xcd   : > { %v5813_v51 = vpack.c.bf16 %v1064_v3, %v1052_v35  ;;  %v5827_v35 = vpack.c.bf16 %v7275_v39, %v7273_v38 }
  0xce   : > { %6180 = vmatpush1.bf16.msra.mxu1 %v7264_v26 }
  0xcf   : > { %6182 = vmatprep.subr.bf16.mxu1 %v7277_v44  ;;  %5800 = vmatpush1.bf16.msra.mxu0 %v7308_v63 }
  0xd0   : > { %5802 = vmatprep.subr.bf16.mxu0 %v5801_v13 }
  0xd2   : > { %6184 = vmatpush1.bf16.msra.mxu1 %v7308_v63  ;;  %970 = vmatmul.mubr.f32.vlgmr.msra.gmra.mrb[0].mxu0 %v969_v45  ;;  %v1058_v45 = vand.u32 4294901760, %v1057_v33 }
  0xd3   : > { %6186 = vmatprep.subr.bf16.mxu1 %v5801_v13  ;;  %5804 = vmatpush1.bf16.msra.mxu0 %v5803_v61  ;;  %v5811_v13 = vpack.c.bf16 %v1046_v28, %v1034_v10  ;;  %v5821_v28 = vpack.c.bf16 %v7228_v36, %v7226_v15  ;;  %v5823_v10 = vpack.c.bf16 %v7243_v46, %v7231_v4  ;;  %v8063_v15 = vand.u32 4294901760, %v7275_v39 }
  0xd4   : > { %5806 = vmatprep.subr.bf16.mxu0 %v5805_v48  ;;  %1120 = vmatprep.mubr.f32.mxu0 %v6779_v0  ;;  %v5815_v52 = vpack.c.bf16 %v1070_v49, %v1058_v45  ;;  %v8064_v4 = vand.u32 4294901760, %v7303_v58  ;;  %v5863_v46 = vpack.c.bf16 %v1068_v30, %v1056_v23  ;;  %v1542_v30 = vld [vmem:[#allocation5 + $0x140] sm:$0xff]  ;;  %v1547_v45 = vld [vmem:[#allocation5 + $0x168] sm:$0xff]  ;;  %v1549_v49 = vld [vmem:[#allocation5 + $0x178] sm:$0xff] }
  0xd5   : > { %3650 = vmatmul.mubr.f32.vlgmr.msra.gmra.mrb[0].mxu1 %v3649_v53  ;;  %v5680_v53 = vld [vmem:[%s6951_s24 + $0x30] sm:$0xff] }
  0xd6   : > { %6188 = vmatpush1.bf16.msra.mxu1 %v5803_v61  ;;  %3800 = vmatprep.mubr.f32.mxu1 %v6779_v0  ;;  %v5819_v61 = vpack.c.bf16 %v7222_v43, %v7220_v37  ;;  %v5857_v37 = vpack.c.bf16 %v1038_v27, %v1026_v21  ;;  %v8062_v43 = vand.u32 4294901760, %v7273_v38  ;;  %v5861_v47 = vpack.c.bf16 %v8065_v32, %v8064_v4 }
  0xd7   : > { %6190 = vmatprep.subr.bf16.mxu1 %v5805_v48  ;;  %5808 = vmatpush1.bf16.msra.mxu0 %v5807_v2  ;;  %v5829_v48 = vpack.c.bf16 %v7305_v59, %v7303_v58  ;;  %v1555_v38 = vand.u32 4294901760, %v1534_v1  ;;  %v1543_v58 = vld [vmem:[#allocation5 + $0x148] sm:$0xff]  ;;  %v1545_v59 = vld [vmem:[#allocation5 + $0x158] sm:$0xff]  ;;  %v1551_v27 = vsel %vm230_vm0, %v5676_v55, 0 }
  0xd8   : > { %5810 = vmatprep.subr.bf16.mxu0 %v5809_v29  ;;  %v5859_v36 = vpack.c.bf16 %v8063_v15, %v8062_v43  ;;  %v1569_v33 = vand.u32 4294901760, %v1543_v58  ;;  %v1573_v34 = vand.u32 4294901760, %v1545_v59 }
  0xda   : > { %6192 = vmatpush1.bf16.msra.mxu1 %v5807_v2 }
  0xdb   : > { %6194 = vmatprep.subr.bf16.mxu1 %v5809_v29  ;;  %5812 = vmatpush1.bf16.msra.mxu0 %v5811_v13  ;;  %v5825_v29 = vpack.c.bf16 %v7256_v18, %v7254_v17  ;;  %v1536_v17 = vld [vmem:[#allocation5 + $0x110] sm:$0xff]  ;;  %v1553_v18 = vand.u32 4294901760, %v1535_v50 }
  0xdc   : > { %5814 = vmatprep.subr.bf16.mxu0 %v5813_v51  ;;  %v1559_v39 = vand.u32 4294901760, %v1536_v17 }
  0xde   : > { %6196 = vmatpush1.bf16.msra.mxu1 %v5811_v13  ;;  %v7470_v23 = vpack.c.bf16 %v1559_v39, %v1555_v38  ;;  %v7476_v2 = vsub.f32 %v1536_v17, %v1559_v39 }
  0xdf   : > { %6198 = vmatprep.subr.bf16.mxu1 %v5813_v51  ;;  %5816 = vmatpush1.bf16.msra.mxu0 %v5815_v52  ;;  %v7484_v51 = vand.u32 4294901760, %v1551_v27 }
  0xe0   : > { %5818 = vmatprep.subr.bf16.mxu0 %v5817_v62  ;;  %v1665_v43 = vand.u32 4294901760, %v7476_v2 }
  0xe2   : > { %6200 = vmatpush1.bf16.msra.mxu1 %v5815_v52  ;;  %1122 = vmatmul.mubr.f32.vlgmr.msra.gmra.mrb[0].mxu0 %v7233_v12 }
  0xe3   : > { %6202 = vmatprep.subr.bf16.mxu1 %v5817_v62  ;;  %5820 = vmatpush1.bf16.msra.mxu0 %v5819_v61  ;;  %v1571_v62 = vand.u32 4294901760, %v1542_v30 }
  0xe4   : > { %5822 = vmatprep.subr.bf16.mxu0 %v5821_v28  ;;  %1224 = vmatprep.mubr.f32.mxu0 %v6779_v0 }
  0xe5   : > { %3802 = vmatmul.mubr.f32.vlgmr.msra.gmra.mrb[0].mxu1 %v7249_v60 }
  0xe6   : > { %6204 = vmatpush1.bf16.msra.mxu1 %v5819_v61  ;;  %3904 = vmatprep.mubr.f32.mxu1 %v6779_v0  ;;  %v1575_v61 = vand.u32 4294901760, %v1544_v6 }
  0xe7   : > { %6206 = vmatprep.subr.bf16.mxu1 %v5821_v28  ;;  %5824 = vmatpush1.bf16.msra.mxu0 %v5823_v10  ;;  %v4230_v28 = vsel %vm230_vm0, %v5680_v53, 0 }
  0xe8   : > { %5826 = vmatprep.subr.bf16.mxu0 %v5825_v29  ;;  %v7508_v15 = vand.u32 4294901760, %v4230_v28  ;;  %v7514_v4 = vpack.c.bf16 %v1575_v61, %v1571_v62 }
  0xea   : > { %6208 = vmatpush1.bf16.msra.mxu1 %v5823_v10 }
  0xeb   : > { %6210 = vmatprep.subr.bf16.mxu1 %v5825_v29  ;;  %5828 = vmatpush1.bf16.msra.mxu0 %v5827_v35 }
  0xec   : > { %5830 = vmatprep.subr.bf16.mxu0 %v5829_v48 }
  0xee   : > { %6212 = vmatpush1.bf16.msra.mxu1 %v5827_v35 }
  0xef   : > { %6214 = vmatprep.subr.bf16.mxu1 %v5829_v48  ;;  %5832 = vmatpush1.bf16.msra.mxu0 %v5831_v31 }
  0xf0   : > { %5834 = vmatprep.subr.bf16.mxu0 %v7207_v9 }
  0xf2   : > { %6216 = vmatpush1.bf16.msra.mxu1 %v5831_v31  ;;  %1227 = vmatmul.mubr.f32.vlgmr.msra.gmra.mrb[0].mxu0 %v7259_v19  ;;  %v1557_v19 = vand.u32 4294901760, %v1537_v57  ;;  %v7501_v31 = vsub.f32 %v1543_v58, %v1569_v33 }
  0xf3   : > { %6218 = vmatprep.subr.bf16.mxu1 %v7207_v9  ;;  %5836 = vmatpush1.bf16.msra.mxu0 %v7218_v41 }
  0xf4   : > { %5838 = vmatprep.subr.bf16.mxu0 %v7224_v7  ;;  %1313 = vmatprep.mubr.f32.mxu0 %v6779_v0  ;;  %v7461_v8 = vpack.c.bf16 %v1557_v19, %v1553_v18  ;;  %v7468_v5 = vsub.f32 %v1537_v57, %v1557_v19 }
  0xf5   : > { %3907 = vmatmul.mubr.f32.vlgmr.msra.gmra.mrb[0].mxu1 %v7288_v16  ;;  %v1538_v16 = vld [vmem:[#allocation5 + $0x120] sm:$0xff] }
  0xf6   : > { %6220 = vmatpush1.bf16.msra.mxu1 %v7218_v41  ;;  %3993 = vmatprep.mubr.f32.mxu1 %v6779_v0  ;;  %v1563_v21 = vand.u32 4294901760, %v1538_v16  ;;  %v1659_v48 = vand.u32 4294901760, %v7468_v5 }
  0xf7   : > { %6222 = vmatprep.subr.bf16.mxu1 %v7224_v7  ;;  %5840 = vmatpush1.bf16.msra.mxu0 %v7238_v20 }
  0xf8   : > { %5842 = vmatprep.subr.bf16.mxu0 %v7245_v22  ;;  %v7492_v10 = vsub.f32 %v1538_v16, %v1563_v21 }
  0xfa   : > { %6224 = vmatpush1.bf16.msra.mxu1 %v7238_v20  ;;  %v1677_v39 = vand.u32 4294901760, %v7492_v10 }
  0xfb   : > { %6226 = vmatprep.subr.bf16.mxu1 %v7245_v22  ;;  %5844 = vmatpush1.bf16.msra.mxu0 %v7264_v26 }
  0xfc   : > { %5846 = vmatprep.subr.bf16.mxu0 %v7277_v44 }
  0xfe   : > { %6228 = vmatpush1.bf16.msra.mxu1 %v7264_v26 }
  0xff   : > { %6230 = vmatprep.subr.bf16.mxu1 %v7277_v44  ;;  %5848 = vmatpush1.bf16.msra.mxu0 %v7308_v63 }
 0x100   : > { %5850 = vmatprep.subr.bf16.mxu0 %v5849_v42 }
 0x102   : > { %6232 = vmatpush1.bf16.msra.mxu1 %v7308_v63  ;;  %1317 = vmatmul.mubr.f32.vlgmr.msra.gmra.mrb[0].mxu0 %v967_v14  ;;  %v1540_v14 = vld [vmem:[#allocation5 + $0x130] sm:$0xff] }
 0x103   : > { %6234 = vmatprep.subr.bf16.mxu1 %v5849_v42  ;;  %5852 = vmatpush1.bf16.msra.mxu0 %v5851_v54  ;;  %v1577_v42 = vand.u32 4294901760, %v1547_v45 }
 0x104   : > { %5854 = vmatprep.subr.bf16.mxu0 %v5853_v11  ;;  %1435 = vmatprep.mubr.f32.mxu0 %v6779_v0 }
 0x105   : > { %3997 = vmatmul.mubr.f32.vlgmr.msra.gmra.mrb[0].mxu1 %v3647_v40  ;;  %v7466_v40 = vsub.f32 %v1535_v50, %v1553_v18  ;;  %v7529_v50 = vsub.f32 %v1544_v6, %v1575_v61 }
 0x106   : > { %6236 = vmatpush1.bf16.msra.mxu1 %v5851_v54  ;;  %4115 = vmatprep.mubr.f32.mxu1 %v6779_v0  ;;  %v1581_v54 = vand.u32 4294901760, %v1549_v49 }
 0x107   : > { %6238 = vmatprep.subr.bf16.mxu1 %v5853_v11  ;;  %5856 = vmatpush1.bf16.msra.mxu0 %v5855_v25  ;;  %v1647_v35 = vand.u32 4294901760, %v7466_v40  ;;  %v1546_v11 = vld [vmem:[#allocation5 + $0x160] sm:$0xff] }
 0x108   : > { %5858 = vmatprep.subr.bf16.mxu0 %v5857_v37  ;;  %v7531_v57 = vpack.c.bf16 %v1581_v54, %v1577_v42  ;;  %v7559_v55 = vsub.f32 %v1549_v49, %v1581_v54 }
 0x10a   : > { %6240 = vmatpush1.bf16.msra.mxu1 %v5855_v25  ;;  %v7504_v25 = vsub.f32 %v1551_v27, %v7484_v51 }
 0x10b   : > { %6242 = vmatprep.subr.bf16.mxu1 %v5857_v37  ;;  %5860 = vmatpush1.bf16.msra.mxu0 %v5859_v36 }
 0x10c   : > { %5862 = vmatprep.subr.bf16.mxu0 %v5861_v47  ;;  %v1636_v18 = vand.u32 4294901760, %v7504_v25 }
 0x10e   : > { %6244 = vmatpush1.bf16.msra.mxu1 %v5859_v36  ;;  %v7512_v36 = vsub.f32 %v1545_v59, %v1573_v34  ;;  %v1637_v27 = vsub.f32 %v7504_v25, %v1636_v18 }
 0x10f   : > { %6246 = vmatprep.subr.bf16.mxu1 %v5861_v47  ;;  %5864 = vmatpush1.bf16.msra.mxu0 %v5863_v46 }
 0x110   : > { %5866 = vmatprep.subr.bf16.mxu0 %v7207_v9 }
 0x112   : > { %6248 = vmatpush1.bf16.msra.mxu1 %v5863_v46  ;;  %1437 = vmatmul.mubr.f32.vlgmr.msra.gmra.mrb[0].mxu0 %v7233_v12  ;;  %v7520_v46 = vsub.f32 %v1542_v30, %v1571_v62 }
 0x113   : > { %6250 = vmatprep.subr.bf16.mxu1 %v7207_v9  ;;  %5868 = vmatpush1.bf16.msra.mxu0 %v7218_v41  ;;  %v1539_v9 = vld [vmem:[#allocation5 + $0x128] sm:$0xff] }
 0x114   : > { %5870 = vmatprep.subr.bf16.mxu0 %v7224_v7  ;;  %1523 = vmatprep.mubr.f32.mxu0 %v6779_v0  ;;  %v1561_v56 = vand.u32 4294901760, %v1539_v9 }
 0x115   : > { %4117 = vmatmul.mubr.f32.vlgmr.msra.gmra.mrb[0].mxu1 %v7249_v60 }
 0x116   : > { %6252 = vmatpush1.bf16.msra.mxu1 %v7218_v41  ;;  %4203 = vmatprep.mubr.f32.mxu1 %v6779_v0  ;;  %v1565_v41 = vand.u32 4294901760, %v1541_v24  ;;  %v7480_v3 = vsub.f32 %v1539_v9, %v1561_v56  ;;  %v1666_v9 = vsub.f32 %v7476_v2, %v1665_v43 }
 0x117   : > { %6254 = vmatprep.subr.bf16.mxu1 %v7224_v7  ;;  %5872 = vmatpush1.bf16.msra.mxu0 %v7238_v20  ;;  %v1567_v7 = vand.u32 4294901760, %v1540_v14 }
 0x118   : > { %5874 = vmatprep.subr.bf16.mxu0 %v7245_v22  ;;  %v7482_v13 = vsub.f32 %v1541_v24, %v1565_v41  ;;  %v1671_v32 = vand.u32 4294901760, %v7480_v3  ;;  %v7543_v24 = vsub.f32 %v4230_v28, %v7508_v15  ;;  %v1667_v6 = vand.u32 4294901760, %v1666_v9 }
 0x119   : > { %v7487_v52 = vpack.c.bf16 %v1567_v7, %v1563_v21  ;;  %v7494_v29 = vsub.f32 %v1540_v14, %v1567_v7  ;;  %v7557_v14 = vsub.f32 %v1547_v45, %v1577_v42  ;;  %v1695_v21 = vand.u32 4294901760, %v7501_v31 }
 0x11a   : > { %6256 = vmatpush1.bf16.msra.mxu1 %v7238_v20  ;;  %v7474_v20 = vsub.f32 %v1534_v1, %v1555_v38  ;;  %v1683_v47 = vand.u32 4294901760, %v7482_v13  ;;  %v1579_v1 = vand.u32 4294901760, %v1546_v11  ;;  %v1707_v7 = vand.u32 4294901760, %v7512_v36 }
 0x11b   : > { %6258 = vmatprep.subr.bf16.mxu1 %v7245_v22  ;;  %5876 = vmatpush1.bf16.msra.mxu0 %v7264_v26  ;;  %v7478_v22 = vpack.c.bf16 %v1565_v41, %v1561_v56  ;;  %v1689_v16 = vand.u32 4294901760, %v7494_v29  ;;  %v4315_v53 = vand.u32 4294901760, %v7543_v24  ;;  %v1678_v45 = vsub.f32 %v7492_v10, %v1677_v39 }
 0x11c   : > { %5878 = vmatprep.subr.bf16.mxu0 %v7277_v44  ;;  %v1653_v37 = vand.u32 4294901760, %v7474_v20  ;;  %v1684_v38 = vsub.f32 %v7482_v13, %v1683_v47  ;;  %v7564_v59 = vsub.f32 %v1546_v11, %v1579_v1  ;;  %v8042_v28 = vand.u32 4294901760, %v7520_v46 }
 0x11d   : > { %v1690_v49 = vsub.f32 %v7494_v29, %v1689_v16  ;;  %v8041_v42 = vand.u32 4294901760, %v7529_v50  ;;  %v1696_v54 = vsub.f32 %v7501_v31, %v1695_v21  ;;  %v1708_v11 = vsub.f32 %v7512_v36, %v1707_v7 }
 0x11e   : > { %6260 = vmatpush1.bf16.msra.mxu1 %v7264_v26  ;;  %v7499_v26 = vpack.c.bf16 %v1573_v34, %v1569_v33  ;;  %v1654_v19 = vsub.f32 %v7474_v20, %v1653_v37  ;;  %v1685_v34 = vand.u32 4294901760, %v1684_v38  ;;  %v1679_v9 = vand.u32 4294901760, %v1678_v45 }
 0x11f   : > { %6262 = vmatprep.subr.bf16.mxu1 %v7277_v44  ;;  %5880 = vmatpush1.bf16.msra.mxu0 %v7308_v63  ;;  %v1548_v44 = vld [vmem:[#allocation5 + $0x170] sm:$0xff]  ;;  %v1702_v38 = vsub.f32 %v7520_v46, %v8042_v28 }
 0x120   : > { %5882 = vmatprep.subr.bf16.mxu0 %v7461_v8  ;;  %v1583_v17 = vand.u32 4294901760, %v1548_v44  ;;  %v1655_v30 = vand.u32 4294901760, %v1654_v19 }
 0x122   : > { %6264 = vmatpush1.bf16.msra.mxu1 %v7308_v63  ;;  %1525 = vmatmul.mubr.f32.vlgmr.msra.gmra.mrb[0].mxu0 %v7233_v12  ;;  %v1648_v63 = vsub.f32 %v7466_v40, %v1647_v35  ;;  %v1660_v12 = vsub.f32 %v7468_v5, %v1659_v48  ;;  %v7562_v58 = vpack.c.bf16 %v1583_v17, %v1579_v1 }
 0x123   : > { %6266 = vmatprep.subr.bf16.mxu1 %v7461_v8  ;;  %5884 = vmatpush1.bf16.msra.mxu0 %v7470_v23  ;;  %v7581_v62 = vsub.f32 %v1548_v44, %v1583_v17  ;;  %v8044_v44 = vand.u32 4294901760, %v7559_v55  ;;  %v4316_v1 = vsub.f32 %v7543_v24, %v4315_v53  ;;  %v5899_v17 = vpack.c.bf16 %v1667_v6, %v1655_v30 }
 0x124   : > { %5886 = vmatprep.subr.bf16.mxu0 %v7478_v22  ;;  %1633 = vmatprep.mubr.f32.mxu0 %v6779_v0  ;;  %v1649_v56 = vand.u32 4294901760, %v1648_v63  ;;  %v1661_v41 = vand.u32 4294901760, %v1660_v12  ;;  %v8043_v63 = vand.u32 4294901760, %v7557_v14  ;;  %v1638_v12 = vand.u32 4294901760, %v1637_v27 }
 0x125   : > { %4205 = vmatmul.mubr.f32.vlgmr.msra.gmra.mrb[0].mxu1 %v7249_v60  ;;  %v1672_v60 = vsub.f32 %v7480_v3, %v1671_v32  ;;  %v1737_v27 = vand.u32 4294901760, %v7581_v62  ;;  %v1697_v30 = vand.u32 4294901760, %v1696_v54  ;;  %v1709_v6 = vand.u32 4294901760, %v1708_v11 }
 0x126   : > { %6268 = vmatpush1.bf16.msra.mxu1 %v7470_v23  ;;  %4312 = vmatprep.mubr.f32.mxu1 %v6779_v0  ;;  %v5897_v61 = vpack.c.bf16 %v1661_v41, %v1649_v56  ;;  %v1714_v56 = vsub.f32 %v7529_v50, %v8041_v42  ;;  %v1725_v41 = vand.u32 4294901760, %v7564_v59  ;;  %v4317_v45 = vand.u32 4294901760, %v4316_v1 }
 0x127   : > { %6270 = vmatprep.subr.bf16.mxu1 %v7478_v22  ;;  %5888 = vmatpush1.bf16.msra.mxu0 %v7487_v52  ;;  %v1673_v33 = vand.u32 4294901760, %v1672_v60  ;;  %v1691_v60 = vand.u32 4294901760, %v1690_v49  ;;  %v1703_v42 = vand.u32 4294901760, %v1702_v38  ;;  %v1738_v11 = vsub.f32 %v7581_v62, %v1737_v27 }
 0x128   : > { %5890 = vmatprep.subr.bf16.mxu0 %v7499_v26  ;;  %v1715_v28 = vand.u32 4294901760, %v1714_v56  ;;  %v1726_v54 = vsub.f32 %v7564_v59, %v1725_v41  ;;  %v5913_v56 = vpack.c.bf16 %v7468_v5, %v7466_v40  ;;  %v5949_v40 = vpack.c.bf16 %v1683_v47, %v1671_v32  ;;  %v2212_v47 = vld [vmem:[#allocation5 + $0x1b8] sm:$0xff] }
 0x129   : > { %v5901_v19 = vpack.c.bf16 %v1685_v34, %v1673_v33  ;;  %v1720_v33 = vsub.f32 %v7557_v14, %v8043_v63  ;;  %v1732_v34 = vsub.f32 %v7559_v55, %v8044_v44  ;;  %v5903_v49 = vpack.c.bf16 %v1691_v60, %v1679_v9 }
 0x12a   : > { %6272 = vmatpush1.bf16.msra.mxu1 %v7487_v52  ;;  %v5905_v63 = vpack.c.bf16 %v1709_v6, %v1697_v30  ;;  %v1739_v9 = vand.u32 4294901760, %v1738_v11  ;;  %v5927_v30 = vpack.c.bf16 %v7581_v62, %v7564_v59  ;;  %v5945_v6 = vpack.c.bf16 %v1659_v48, %v1647_v35 }
 0x12b   : > { %6274 = vmatprep.subr.bf16.mxu1 %v7499_v26  ;;  %5892 = vmatpush1.bf16.msra.mxu0 %v7514_v4  ;;  %v1721_v44 = vand.u32 4294901760, %v1720_v33  ;;  %v1733_v1 = vand.u32 4294901760, %v1732_v34  ;;  %v5947_v33 = vpack.c.bf16 %v1665_v43, %v1653_v37  ;;  %v5951_v5 = vpack.c.bf16 %v1689_v16, %v1677_v39  ;;  %v2205_v37 = vld [vmem:[#allocation5 + $0x180] sm:$0xff]  ;;  %v2207_v43 = vld [vmem:[#allocation5 + $0x190] sm:$0xff]  ;;  %v5677_v39 = vld [vmem:[%s6951_s24 + $0x18] sm:$0xff] }
 0x12c   : > { %5894 = vmatprep.subr.bf16.mxu0 %v7531_v57  ;;  %v5959_v48 = vpack.c.bf16 %v1737_v27, %v1725_v41  ;;  %v2213_v27 = vld [vmem:[#allocation5 + $0x1c0] sm:$0xff]  ;;  %v2215_v34 = vld [vmem:[#allocation5 + $0x1d0] sm:$0xff] }
 0x12d   : > { %v5909_v60 = vpack.c.bf16 %v1733_v1, %v1721_v44  ;;  %v5923_v44 = vpack.c.bf16 %v7529_v50, %v7520_v46 }
 0x12e   : > { %6276 = vmatpush1.bf16.msra.mxu1 %v7514_v4 }
 0x12f   : > { %6278 = vmatprep.subr.bf16.mxu1 %v7531_v57  ;;  %5896 = vmatpush1.bf16.msra.mxu0 %v7562_v58 }
 0x130   : > { %5898 = vmatprep.subr.bf16.mxu0 %v5897_v61 }
 0x132   : > { %6280 = vmatpush1.bf16.msra.mxu1 %v7562_v58  ;;  %1639 = vmatmul.mubr.f32.vlgmr.msra.gmra.mrb[0].mxu0 %v1638_v12  ;;  %v1727_v12 = vand.u32 4294901760, %v1726_v54 }
 0x133   : > { %6282 = vmatprep.subr.bf16.mxu1 %v5897_v61  ;;  %5900 = vmatpush1.bf16.msra.mxu0 %v5899_v17  ;;  %v5907_v61 = vpack.c.bf16 %v1715_v28, %v1703_v42  ;;  %v5917_v28 = vpack.c.bf16 %v7482_v13, %v7480_v3  ;;  %v5919_v42 = vpack.c.bf16 %v7494_v29, %v7492_v10  ;;  %v8067_v3 = vand.u32 4294901760, %v7529_v50 }
 0x134   : > { %5902 = vmatprep.subr.bf16.mxu0 %v5901_v19  ;;  %1789 = vmatprep.mubr.f32.mxu0 %v6779_v0  ;;  %v5911_v38 = vpack.c.bf16 %v1739_v9, %v1727_v12  ;;  %v8068_v10 = vand.u32 4294901760, %v7557_v14  ;;  %v8069_v29 = vand.u32 4294901760, %v7559_v55  ;;  %v2230_v50 = vand.u32 4294901760, %v2207_v43  ;;  %v2218_v12 = vld [vmem:[#allocation5 + $0x1e8] sm:$0xff]  ;;  %v2220_v9 = vld [vmem:[#allocation5 + $0x1f8] sm:$0xff] }
 0x135   : > { %4318 = vmatmul.mubr.f32.vlgmr.msra.gmra.mrb[0].mxu1 %v4317_v45  ;;  %v5681_v45 = vld [vmem:[%s6951_s24 + $0x38] sm:$0xff] }
 0x136   : > { %6284 = vmatpush1.bf16.msra.mxu1 %v5899_v17  ;;  %4468 = vmatprep.mubr.f32.mxu1 %v6779_v0  ;;  %v5915_v17 = vpack.c.bf16 %v7476_v2, %v7474_v20  ;;  %v5953_v20 = vpack.c.bf16 %v1707_v7, %v1695_v21  ;;  %v8066_v2 = vand.u32 4294901760, %v7520_v46  ;;  %v5957_v35 = vpack.c.bf16 %v8069_v29, %v8068_v10 }
 0x137   : > { %6286 = vmatprep.subr.bf16.mxu1 %v5901_v19  ;;  %5904 = vmatpush1.bf16.msra.mxu0 %v5903_v49  ;;  %v5925_v19 = vpack.c.bf16 %v7559_v55, %v7557_v14  ;;  %v2226_v46 = vand.u32 4294901760, %v2205_v37  ;;  %v2214_v14 = vld [vmem:[#allocation5 + $0x1c8] sm:$0xff]  ;;  %v2216_v55 = vld [vmem:[#allocation5 + $0x1d8] sm:$0xff]  ;;  %v2222_v7 = vsel %vm230_vm0, %v5677_v39, 0 }
 0x138   : > { %5906 = vmatprep.subr.bf16.mxu0 %v5905_v63  ;;  %v5955_v13 = vpack.c.bf16 %v8067_v3, %v8066_v2  ;;  %v2240_v54 = vand.u32 4294901760, %v2214_v14  ;;  %v2244_v11 = vand.u32 4294901760, %v2216_v55 }
 0x139   : > { %v7724_v41 = vpack.c.bf16 %v2230_v50, %v2226_v46 }
 0x13a   : > { %6288 = vmatpush1.bf16.msra.mxu1 %v5903_v49  ;;  %v7730_v49 = vsub.f32 %v2207_v43, %v2230_v50 }
 0x13b   : > { %6290 = vmatprep.subr.bf16.mxu1 %v5905_v63  ;;  %5908 = vmatpush1.bf16.msra.mxu0 %v5907_v61  ;;  %v5921_v63 = vpack.c.bf16 %v7512_v36, %v7501_v31  ;;  %v2206_v31 = vld [vmem:[#allocation5 + $0x188] sm:$0xff] }
 0x13c   : > { %5910 = vmatprep.subr.bf16.mxu0 %v5909_v60  ;;  %v2224_v36 = vand.u32 4294901760, %v2206_v31  ;;  %v2336_v2 = vand.u32 4294901760, %v7730_v49 }
 0x13e   : > { %6292 = vmatpush1.bf16.msra.mxu1 %v5907_v61 }
 0x13f   : > { %6294 = vmatprep.subr.bf16.mxu1 %v5909_v60  ;;  %5912 = vmatpush1.bf16.msra.mxu0 %v5911_v38  ;;  %v7738_v60 = vand.u32 4294901760, %v2222_v7 }
 0x140   : > { %5914 = vmatprep.subr.bf16.mxu0 %v5913_v56 }
 0x142   : > { %6296 = vmatpush1.bf16.msra.mxu1 %v5911_v38  ;;  %1791 = vmatmul.mubr.f32.vlgmr.msra.gmra.mrb[0].mxu0 %v7484_v51 }
 0x143   : > { %6298 = vmatprep.subr.bf16.mxu1 %v5913_v56  ;;  %5916 = vmatpush1.bf16.msra.mxu0 %v5915_v17  ;;  %v2242_v56 = vand.u32 4294901760, %v2213_v27 }
 0x144   : > { %5918 = vmatprep.subr.bf16.mxu0 %v5917_v28  ;;  %1893 = vmatprep.mubr.f32.mxu0 %v6779_v0 }
 0x145   : > { %4470 = vmatmul.mubr.f32.vlgmr.msra.gmra.mrb[0].mxu1 %v7508_v15 }
 0x146   : > { %6300 = vmatpush1.bf16.msra.mxu1 %v5915_v17  ;;  %4572 = vmatprep.mubr.f32.mxu1 %v6779_v0  ;;  %v2246_v17 = vand.u32 4294901760, %v2215_v34 }
 0x147   : > { %6302 = vmatprep.subr.bf16.mxu1 %v5917_v28  ;;  %5920 = vmatpush1.bf16.msra.mxu0 %v5919_v42  ;;  %v4900_v28 = vsel %vm230_vm0, %v5681_v45, 0 }
 0x148   : > { %5922 = vmatprep.subr.bf16.mxu0 %v5921_v63  ;;  %v7762_v3 = vand.u32 4294901760, %v4900_v28  ;;  %v7768_v10 = vpack.c.bf16 %v2246_v17, %v2242_v56 }
 0x14a   : > { %6304 = vmatpush1.bf16.msra.mxu1 %v5919_v42 }
 0x14b   : > { %6306 = vmatprep.subr.bf16.mxu1 %v5921_v63  ;;  %5924 = vmatpush1.bf16.msra.mxu0 %v5923_v44 }
 0x14c   : > { %5926 = vmatprep.subr.bf16.mxu0 %v5925_v19 }
 0x14e   : > { %6308 = vmatpush1.bf16.msra.mxu1 %v5923_v44 }
 0x14f   : > { %6310 = vmatprep.subr.bf16.mxu1 %v5925_v19  ;;  %5928 = vmatpush1.bf16.msra.mxu0 %v5927_v30 }
 0x150   : > { %5930 = vmatprep.subr.bf16.mxu0 %v7461_v8 }
 0x152   : > { %6312 = vmatpush1.bf16.msra.mxu1 %v5927_v30  ;;  %1896 = vmatmul.mubr.f32.vlgmr.msra.gmra.mrb[0].mxu0 %v7504_v25  ;;  %v2208_v25 = vld [vmem:[#allocation5 + $0x198] sm:$0xff]  ;;  %v7755_v30 = vsub.f32 %v2214_v14, %v2240_v54 }
 0x153   : > { %6314 = vmatprep.subr.bf16.mxu1 %v7461_v8  ;;  %5932 = vmatpush1.bf16.msra.mxu0 %v7470_v23  ;;  %v2228_v32 = vand.u32 4294901760, %v2208_v25 }
 0x154   : > { %5934 = vmatprep.subr.bf16.mxu0 %v7478_v22  ;;  %1982 = vmatprep.mubr.f32.mxu0 %v6779_v0 }
 0x155   : > { %4575 = vmatmul.mubr.f32.vlgmr.msra.gmra.mrb[0].mxu1 %v7543_v24  ;;  %v2211_v24 = vld [vmem:[#allocation5 + $0x1b0] sm:$0xff]  ;;  %v7715_v59 = vpack.c.bf16 %v2228_v32, %v2224_v36  ;;  %v7722_v62 = vsub.f32 %v2208_v25, %v2228_v32 }
 0x156   : > { %6316 = vmatpush1.bf16.msra.mxu1 %v7470_v23  ;;  %4661 = vmatprep.mubr.f32.mxu1 %v6779_v0 }
 0x157   : > { %6318 = vmatprep.subr.bf16.mxu1 %v7478_v22  ;;  %5936 = vmatpush1.bf16.msra.mxu0 %v7487_v52  ;;  %v2330_v19 = vand.u32 4294901760, %v7722_v62 }
 0x158   : > { %5938 = vmatprep.subr.bf16.mxu0 %v7499_v26 }
 0x15a   : > { %6320 = vmatpush1.bf16.msra.mxu1 %v7487_v52 }
 0x15b   : > { %6322 = vmatprep.subr.bf16.mxu1 %v7499_v26  ;;  %5940 = vmatpush1.bf16.msra.mxu0 %v7514_v4 }
 0x15c   : > { %5942 = vmatprep.subr.bf16.mxu0 %v7531_v57 }
 0x15e   : > { %6324 = vmatpush1.bf16.msra.mxu1 %v7514_v4 }
 0x15f   : > { %6326 = vmatprep.subr.bf16.mxu1 %v7531_v57  ;;  %5944 = vmatpush1.bf16.msra.mxu0 %v7562_v58 }
 0x160   : > { %5946 = vmatprep.subr.bf16.mxu0 %v5945_v6 }
 0x162   : > { %6328 = vmatpush1.bf16.msra.mxu1 %v7562_v58  ;;  %1986 = vmatmul.mubr.f32.vlgmr.msra.gmra.mrb[0].mxu0 %v1636_v18  ;;  %v2209_v18 = vld [vmem:[#allocation5 + $0x1a0] sm:$0xff] }
 0x163   : > { %6330 = vmatprep.subr.bf16.mxu1 %v5945_v6  ;;  %5948 = vmatpush1.bf16.msra.mxu0 %v5947_v33  ;;  %v2234_v21 = vand.u32 4294901760, %v2209_v18  ;;  %v2248_v6 = vand.u32 4294901760, %v2218_v12 }
 0x164   : > { %5950 = vmatprep.subr.bf16.mxu0 %v5949_v40  ;;  %2104 = vmatprep.mubr.f32.mxu0 %v6779_v0 }
 0x165   : > { %4665 = vmatmul.mubr.f32.vlgmr.msra.gmra.mrb[0].mxu1 %v4315_v53  ;;  %v7720_v53 = vsub.f32 %v2206_v31, %v2224_v36  ;;  %v7746_v42 = vsub.f32 %v2209_v18, %v2234_v21  ;;  %v7783_v31 = vsub.f32 %v2215_v34, %v2246_v17 }
 0x166   : > { %6332 = vmatpush1.bf16.msra.mxu1 %v5947_v33  ;;  %4783 = vmatprep.mubr.f32.mxu1 %v6779_v0  ;;  %v2252_v33 = vand.u32 4294901760, %v2220_v9 }
 0x167   : > { %6334 = vmatprep.subr.bf16.mxu1 %v5949_v40  ;;  %5952 = vmatpush1.bf16.msra.mxu0 %v5951_v5  ;;  %v2318_v44 = vand.u32 4294901760, %v7720_v53  ;;  %v2217_v40 = vld [vmem:[#allocation5 + $0x1e0] sm:$0xff]  ;;  %v2348_v50 = vand.u32 4294901760, %v7746_v42 }
 0x168   : > { %5954 = vmatprep.subr.bf16.mxu0 %v5953_v20  ;;  %v7785_v25 = vpack.c.bf16 %v2252_v33, %v2248_v6  ;;  %v7813_v39 = vsub.f32 %v2220_v9, %v2252_v33 }
 0x16a   : > { %6336 = vmatpush1.bf16.msra.mxu1 %v5951_v5  ;;  %v7758_v5 = vsub.f32 %v2222_v7, %v7738_v60 }
 0x16b   : > { %6338 = vmatprep.subr.bf16.mxu1 %v5953_v20  ;;  %5956 = vmatpush1.bf16.msra.mxu0 %v5955_v13 }
 0x16c   : > { %5958 = vmatprep.subr.bf16.mxu0 %v5957_v35  ;;  %v2307_v36 = vand.u32 4294901760, %v7758_v5 }
 0x16e   : > { %6340 = vmatpush1.bf16.msra.mxu1 %v5955_v13  ;;  %v7766_v13 = vsub.f32 %v2216_v55, %v2244_v11  ;;  %v2308_v7 = vsub.f32 %v7758_v5, %v2307_v36 }
 0x16f   : > { %6342 = vmatprep.subr.bf16.mxu1 %v5957_v35  ;;  %5960 = vmatpush1.bf16.msra.mxu0 %v5959_v48 }
 0x170   : > { %5962 = vmatprep.subr.bf16.mxu0 %v7461_v8 }
 0x172   : > { %6344 = vmatpush1.bf16.msra.mxu1 %v5959_v48  ;;  %2106 = vmatmul.mubr.f32.vlgmr.msra.gmra.mrb[0].mxu0 %v7484_v51  ;;  %v7774_v48 = vsub.f32 %v2213_v27, %v2242_v56 }
 0x173   : > { %6346 = vmatprep.subr.bf16.mxu1 %v7461_v8  ;;  %5964 = vmatpush1.bf16.msra.mxu0 %v7470_v23  ;;  %v2210_v8 = vld [vmem:[#allocation5 + $0x1a8] sm:$0xff] }
 0x174   : > { %5966 = vmatprep.subr.bf16.mxu0 %v7478_v22  ;;  %2192 = vmatprep.mubr.f32.mxu0 %v6779_v0  ;;  %v2232_v16 = vand.u32 4294901760, %v2210_v8 }
 0x175   : > { %4785 = vmatmul.mubr.f32.vlgmr.msra.gmra.mrb[0].mxu1 %v7508_v15 }
 0x176   : > { %6348 = vmatpush1.bf16.msra.mxu1 %v7470_v23  ;;  %4871 = vmatprep.mubr.f32.mxu1 %v6779_v0  ;;  %v2236_v23 = vand.u32 4294901760, %v2212_v47  ;;  %v7734_v1 = vsub.f32 %v2210_v8, %v2232_v16  ;;  %v2337_v8 = vsub.f32 %v7730_v49, %v2336_v2 }
 0x177   : > { %6350 = vmatprep.subr.bf16.mxu1 %v7478_v22  ;;  %5968 = vmatpush1.bf16.msra.mxu0 %v7487_v52  ;;  %v2238_v22 = vand.u32 4294901760, %v2211_v24 }
 0x178   : > { %5970 = vmatprep.subr.bf16.mxu0 %v7499_v26  ;;  %v7736_v61 = vsub.f32 %v2212_v47, %v2236_v23  ;;  %v2342_v29 = vand.u32 4294901760, %v7734_v1  ;;  %v7797_v47 = vsub.f32 %v4900_v28, %v7762_v3  ;;  %v2338_v34 = vand.u32 4294901760, %v2337_v8 }
 0x179   : > { %v7741_v38 = vpack.c.bf16 %v2238_v22, %v2234_v21  ;;  %v7748_v63 = vsub.f32 %v2211_v24, %v2238_v22  ;;  %v7811_v24 = vsub.f32 %v2218_v12, %v2248_v6  ;;  %v2366_v21 = vand.u32 4294901760, %v7755_v30 }
 0x17a   : > { %6352 = vmatpush1.bf16.msra.mxu1 %v7487_v52  ;;  %v7728_v52 = vsub.f32 %v2205_v37, %v2226_v46  ;;  %v2354_v35 = vand.u32 4294901760, %v7736_v61  ;;  %v2250_v37 = vand.u32 4294901760, %v2217_v40  ;;  %v2378_v22 = vand.u32 4294901760, %v7766_v13 }
 0x17b   : > { %6354 = vmatprep.subr.bf16.mxu1 %v7499_v26  ;;  %5972 = vmatpush1.bf16.msra.mxu0 %v7514_v4  ;;  %v7732_v26 = vpack.c.bf16 %v2236_v23, %v2232_v16  ;;  %v2360_v18 = vand.u32 4294901760, %v7748_v63  ;;  %v4985_v45 = vand.u32 4294901760, %v7797_v47  ;;  %v2349_v12 = vsub.f32 %v7746_v42, %v2348_v50 }
 0x17c   : > { %5974 = vmatprep.subr.bf16.mxu0 %v7531_v57  ;;  %v2324_v20 = vand.u32 4294901760, %v7728_v52  ;;  %v2355_v46 = vsub.f32 %v7736_v61, %v2354_v35  ;;  %v7818_v55 = vsub.f32 %v2217_v40, %v2250_v37  ;;  %v8046_v28 = vand.u32 4294901760, %v7774_v48 }
 0x17d   : > { %v2361_v9 = vsub.f32 %v7748_v63, %v2360_v18  ;;  %v8045_v6 = vand.u32 4294901760, %v7783_v31  ;;  %v2367_v33 = vsub.f32 %v7755_v30, %v2366_v21  ;;  %v2379_v40 = vsub.f32 %v7766_v13, %v2378_v22 }
 0x17e   : > { %6356 = vmatpush1.bf16.msra.mxu1 %v7514_v4  ;;  %v7753_v4 = vpack.c.bf16 %v2244_v11, %v2240_v54  ;;  %v2325_v32 = vsub.f32 %v7728_v52, %v2324_v20  ;;  %v2356_v11 = vand.u32 4294901760, %v2355_v46  ;;  %v2350_v8 = vand.u32 4294901760, %v2349_v12 }
 0x17f   : > { %6358 = vmatprep.subr.bf16.mxu1 %v7531_v57  ;;  %5976 = vmatpush1.bf16.msra.mxu0 %v7562_v58  ;;  %v2219_v57 = vld [vmem:[#allocation5 + $0x1f0] sm:$0xff]  ;;  %v2373_v46 = vsub.f32 %v7774_v48, %v8046_v28 }
 0x180   : > { %5978 = vmatprep.subr.bf16.mxu0 %v7715_v59  ;;  %v2254_v43 = vand.u32 4294901760, %v2219_v57  ;;  %v2326_v27 = vand.u32 4294901760, %v2325_v32 }
 0x182   : > { %6360 = vmatpush1.bf16.msra.mxu1 %v7562_v58  ;;  %2194 = vmatmul.mubr.f32.vlgmr.msra.gmra.mrb[0].mxu0 %v7484_v51  ;;  %v2319_v58 = vsub.f32 %v7720_v53, %v2318_v44  ;;  %v2331_v51 = vsub.f32 %v7722_v62, %v2330_v19  ;;  %v7816_v14 = vpack.c.bf16 %v2254_v43, %v2250_v37 }
 0x183   : > { %6362 = vmatprep.subr.bf16.mxu1 %v7715_v59  ;;  %5980 = vmatpush1.bf16.msra.mxu0 %v7724_v41  ;;  %v7835_v56 = vsub.f32 %v2219_v57, %v2254_v43  ;;  %v8048_v57 = vand.u32 4294901760, %v7813_v39  ;;  %v4986_v37 = vsub.f32 %v7797_v47, %v4985_v45  ;;  %v5995_v43 = vpack.c.bf16 %v2338_v34, %v2326_v27 }
 0x184   : > { %5982 = vmatprep.subr.bf16.mxu0 %v7732_v26  ;;  %2304 = vmatprep.mubr.f32.mxu0 %v6779_v0  ;;  %v2320_v16 = vand.u32 4294901760, %v2319_v58  ;;  %v2332_v23 = vand.u32 4294901760, %v2331_v51  ;;  %v8047_v58 = vand.u32 4294901760, %v7811_v24  ;;  %v2309_v51 = vand.u32 4294901760, %v2308_v7 }
 0x185   : > { %4873 = vmatmul.mubr.f32.vlgmr.msra.gmra.mrb[0].mxu1 %v7508_v15  ;;  %v2343_v15 = vsub.f32 %v7734_v1, %v2342_v29  ;;  %v2408_v7 = vand.u32 4294901760, %v7835_v56  ;;  %v2368_v27 = vand.u32 4294901760, %v2367_v33  ;;  %v2380_v34 = vand.u32 4294901760, %v2379_v40 }
 0x186   : > { %6364 = vmatpush1.bf16.msra.mxu1 %v7724_v41  ;;  %4982 = vmatprep.mubr.f32.mxu1 %v6779_v0  ;;  %v5993_v17 = vpack.c.bf16 %v2332_v23, %v2320_v16  ;;  %v2385_v16 = vsub.f32 %v7783_v31, %v8045_v6  ;;  %v2396_v23 = vand.u32 4294901760, %v7818_v55  ;;  %v4987_v12 = vand.u32 4294901760, %v4986_v37 }
 0x187   : > { %6366 = vmatprep.subr.bf16.mxu1 %v7732_v26  ;;  %5984 = vmatpush1.bf16.msra.mxu0 %v7741_v38  ;;  %v2344_v54 = vand.u32 4294901760, %v2343_v15  ;;  %v2362_v15 = vand.u32 4294901760, %v2361_v9  ;;  %v2374_v6 = vand.u32 4294901760, %v2373_v46  ;;  %v2409_v40 = vsub.f32 %v7835_v56, %v2408_v7 }
 0x188   : > { %5986 = vmatprep.subr.bf16.mxu0 %v7753_v4  ;;  %v2386_v28 = vand.u32 4294901760, %v2385_v16  ;;  %v2397_v33 = vsub.f32 %v7818_v55, %v2396_v23  ;;  %v6009_v16 = vpack.c.bf16 %v7722_v62, %v7720_v53  ;;  %v6045_v53 = vpack.c.bf16 %v2354_v35, %v2342_v29 }
 0x189   : > { %v5997_v32 = vpack.c.bf16 %v2356_v11, %v2344_v54  ;;  %v2391_v54 = vsub.f32 %v7811_v24, %v8047_v58  ;;  %v2403_v11 = vsub.f32 %v7813_v39, %v8048_v57  ;;  %v5999_v9 = vpack.c.bf16 %v2362_v15, %v2350_v8 }
 0x18a   : > { %6368 = vmatpush1.bf16.msra.mxu1 %v7741_v38  ;;  %v6001_v58 = vpack.c.bf16 %v2380_v34, %v2368_v27  ;;  %v2410_v8 = vand.u32 4294901760, %v2409_v40  ;;  %v6023_v27 = vpack.c.bf16 %v7835_v56, %v7818_v55  ;;  %v6041_v34 = vpack.c.bf16 %v2330_v19, %v2318_v44 }
 0x18b   : > { %6370 = vmatprep.subr.bf16.mxu1 %v7753_v4  ;;  %5988 = vmatpush1.bf16.msra.mxu0 %v7768_v10  ;;  %v2392_v57 = vand.u32 4294901760, %v2391_v54  ;;  %v2404_v37 = vand.u32 4294901760, %v2403_v11  ;;  %v6043_v54 = vpack.c.bf16 %v2336_v2, %v2324_v20  ;;  %v6047_v62 = vpack.c.bf16 %v2360_v18, %v2348_v50 }
 0x18c   : > { %5990 = vmatprep.subr.bf16.mxu0 %v7785_v25  ;;  %v6055_v19 = vpack.c.bf16 %v2408_v7, %v2396_v23 }
 0x18d   : > { %v6005_v15 = vpack.c.bf16 %v2404_v37, %v2392_v57  ;;  %v6019_v57 = vpack.c.bf16 %v7783_v31, %v7774_v48 }
 0x18e   : > { %6372 = vmatpush1.bf16.msra.mxu1 %v7768_v10 }
 0x18f   : > { %6374 = vmatprep.subr.bf16.mxu1 %v7785_v25  ;;  %5992 = vmatpush1.bf16.msra.mxu0 %v7816_v14 }
 0x190   : > { %5994 = vmatprep.subr.bf16.mxu0 %v5993_v17 }
 0x192   : > { %6376 = vmatpush1.bf16.msra.mxu1 %v7816_v14  ;;  %2310 = vmatmul.mubr.f32.vlgmr.msra.gmra.mrb[0].mxu0 %v2309_v51  ;;  %v2398_v51 = vand.u32 4294901760, %v2397_v33 }
 0x193   : > { %6378 = vmatprep.subr.bf16.mxu1 %v5993_v17  ;;  %5996 = vmatpush1.bf16.msra.mxu0 %v5995_v43  ;;  %v6003_v17 = vpack.c.bf16 %v2386_v28, %v2374_v6  ;;  %v6013_v28 = vpack.c.bf16 %v7736_v61, %v7734_v1  ;;  %v6015_v6 = vpack.c.bf16 %v7748_v63, %v7746_v42  ;;  %v8071_v1 = vand.u32 4294901760, %v7783_v31 }
 0x194   : > { %5998 = vmatprep.subr.bf16.mxu0 %v5997_v32  ;;  %2460 = vmatprep.mubr.f32.mxu0 %v6779_v0  ;;  %v6007_v46 = vpack.c.bf16 %v2410_v8, %v2398_v51  ;;  %v8072_v42 = vand.u32 4294901760, %v7811_v24  ;;  %v8073_v63 = vand.u32 4294901760, %v7813_v39 }
 0x195   : > { %4988 = vmatmul.mubr.f32.vlgmr.msra.gmra.mrb[0].mxu1 %v4987_v12 }
 0x196   : > { %6380 = vmatpush1.bf16.msra.mxu1 %v5995_v43  ;;  %5138 = vmatprep.mubr.f32.mxu1 %v6779_v0  ;;  %v6011_v43 = vpack.c.bf16 %v7730_v49, %v7728_v52  ;;  %v6049_v52 = vpack.c.bf16 %v2378_v22, %v2366_v21  ;;  %v8070_v49 = vand.u32 4294901760, %v7774_v48  ;;  %v6053_v44 = vpack.c.bf16 %v8073_v63, %v8072_v42 }
 0x197   : > { %6382 = vmatprep.subr.bf16.mxu1 %v5997_v32  ;;  %6000 = vmatpush1.bf16.msra.mxu0 %v5999_v9  ;;  %v6021_v32 = vpack.c.bf16 %v7813_v39, %v7811_v24 }
 0x198   : > { %6002 = vmatprep.subr.bf16.mxu0 %v6001_v58  ;;  %v6051_v61 = vpack.c.bf16 %v8071_v1, %v8070_v49 }
 0x19a   : > { %6384 = vmatpush1.bf16.msra.mxu1 %v5999_v9 }
 0x19b   : > { %6386 = vmatprep.subr.bf16.mxu1 %v6001_v58  ;;  %6004 = vmatpush1.bf16.msra.mxu0 %v6003_v17  ;;  %v6017_v58 = vpack.c.bf16 %v7766_v13, %v7755_v30 }
 0x19c   : > { %6006 = vmatprep.subr.bf16.mxu0 %v6005_v15 }
 0x19e   : > { %6388 = vmatpush1.bf16.msra.mxu1 %v6003_v17 }
 0x19f   : > { %6390 = vmatprep.subr.bf16.mxu1 %v6005_v15  ;;  %6008 = vmatpush1.bf16.msra.mxu0 %v6007_v46 }
 0x1a0   : > { %6010 = vmatprep.subr.bf16.mxu0 %v6009_v16 }
 0x1a2   : > { %6392 = vmatpush1.bf16.msra.mxu1 %v6007_v46  ;;  %2462 = vmatmul.mubr.f32.vlgmr.msra.gmra.mrb[0].mxu0 %v7738_v60 }
 0x1a3   : > { %6394 = vmatprep.subr.bf16.mxu1 %v6009_v16  ;;  %6012 = vmatpush1.bf16.msra.mxu0 %v6011_v43 }
 0x1a4   : > { %6014 = vmatprep.subr.bf16.mxu0 %v6013_v28  ;;  %2564 = vmatprep.mubr.f32.mxu0 %v6779_v0 }
 0x1a5   : > { %5140 = vmatmul.mubr.f32.vlgmr.msra.gmra.mrb[0].mxu1 %v7762_v3 }
 0x1a6   : > { %6396 = vmatpush1.bf16.msra.mxu1 %v6011_v43  ;;  %5242 = vmatprep.mubr.f32.mxu1 %v6779_v0 }
 0x1a7   : > { %6398 = vmatprep.subr.bf16.mxu1 %v6013_v28  ;;  %6016 = vmatpush1.bf16.msra.mxu0 %v6015_v6 }
 0x1a8   : > { %6018 = vmatprep.subr.bf16.mxu0 %v6017_v58 }
 0x1aa   : > { %6400 = vmatpush1.bf16.msra.mxu1 %v6015_v6 }
 0x1ab   : > { %6402 = vmatprep.subr.bf16.mxu1 %v6017_v58  ;;  %6020 = vmatpush1.bf16.msra.mxu0 %v6019_v57 }
 0x1ac   : > { %6022 = vmatprep.subr.bf16.mxu0 %v6021_v32 }
 0x1ae   : > { %6404 = vmatpush1.bf16.msra.mxu1 %v6019_v57 }
 0x1af   : > { %6406 = vmatprep.subr.bf16.mxu1 %v6021_v32  ;;  %6024 = vmatpush1.bf16.msra.mxu0 %v6023_v27 }
 0x1b0   : > { %6026 = vmatprep.subr.bf16.mxu0 %v7715_v59 }
 0x1b2   : > { %6408 = vmatpush1.bf16.msra.mxu1 %v6023_v27  ;;  %2567 = vmatmul.mubr.f32.vlgmr.msra.gmra.mrb[0].mxu0 %v7758_v5 }
 0x1b3   : > { %6410 = vmatprep.subr.bf16.mxu1 %v7715_v59  ;;  %6028 = vmatpush1.bf16.msra.mxu0 %v7724_v41 }
 0x1b4   : > { %6030 = vmatprep.subr.bf16.mxu0 %v7732_v26  ;;  %2653 = vmatprep.mubr.f32.mxu0 %v6779_v0 }
 0x1b5   : > { %5245 = vmatmul.mubr.f32.vlgmr.msra.gmra.mrb[0].mxu1 %v7797_v47 }
 0x1b6   : > { %6412 = vmatpush1.bf16.msra.mxu1 %v7724_v41  ;;  %5331 = vmatprep.mubr.f32.mxu1 %v6779_v0 }
 0x1b7   : > { %6414 = vmatprep.subr.bf16.mxu1 %v7732_v26  ;;  %6032 = vmatpush1.bf16.msra.mxu0 %v7741_v38 }
 0x1b8   : > { %6034 = vmatprep.subr.bf16.mxu0 %v7753_v4 }
 0x1ba   : > { %6416 = vmatpush1.bf16.msra.mxu1 %v7741_v38 }
 0x1bb   : > { %6418 = vmatprep.subr.bf16.mxu1 %v7753_v4  ;;  %6036 = vmatpush1.bf16.msra.mxu0 %v7768_v10 }
 0x1bc   : > { %6038 = vmatprep.subr.bf16.mxu0 %v7785_v25 }
 0x1be   : > { %6420 = vmatpush1.bf16.msra.mxu1 %v7768_v10 }
 0x1bf   : > { %6422 = vmatprep.subr.bf16.mxu1 %v7785_v25  ;;  %6040 = vmatpush1.bf16.msra.mxu0 %v7816_v14 }
 0x1c0   : > { %6042 = vmatprep.subr.bf16.mxu0 %v6041_v34 }
 0x1c2   : > { %6424 = vmatpush1.bf16.msra.mxu1 %v7816_v14  ;;  %2657 = vmatmul.mubr.f32.vlgmr.msra.gmra.mrb[0].mxu0 %v2307_v36 }
 0x1c3   : > { %6426 = vmatprep.subr.bf16.mxu1 %v6041_v34  ;;  %6044 = vmatpush1.bf16.msra.mxu0 %v6043_v54 }
 0x1c4   : > { %6046 = vmatprep.subr.bf16.mxu0 %v6045_v53  ;;  %2775 = vmatprep.mubr.f32.mxu0 %v6779_v0 }
 0x1c5   : > { %5335 = vmatmul.mubr.f32.vlgmr.msra.gmra.mrb[0].mxu1 %v4985_v45 }
 0x1c6   : > { %6428 = vmatpush1.bf16.msra.mxu1 %v6043_v54  ;;  %5453 = vmatprep.mubr.f32.mxu1 %v6779_v0 }
 0x1c7   : > { %6430 = vmatprep.subr.bf16.mxu1 %v6045_v53  ;;  %6048 = vmatpush1.bf16.msra.mxu0 %v6047_v62 }
 0x1c8   : > { %6050 = vmatprep.subr.bf16.mxu0 %v6049_v52 }
 0x1ca   : > { %6432 = vmatpush1.bf16.msra.mxu1 %v6047_v62 }
 0x1cb   : > { %6434 = vmatprep.subr.bf16.mxu1 %v6049_v52  ;;  %6052 = vmatpush1.bf16.msra.mxu0 %v6051_v61 }
 0x1cc   : > { %6054 = vmatprep.subr.bf16.mxu0 %v6053_v44 }
 0x1ce   : > { %6436 = vmatpush1.bf16.msra.mxu1 %v6051_v61 }
 0x1cf   : > { %6438 = vmatprep.subr.bf16.mxu1 %v6053_v44  ;;  %6056 = vmatpush1.bf16.msra.mxu0 %v6055_v19 }
 0x1d0   : > { %6058 = vmatprep.subr.bf16.mxu0 %v7715_v59 }
 0x1d2   : > { %6440 = vmatpush1.bf16.msra.mxu1 %v6055_v19  ;;  %2777 = vmatmul.mubr.f32.vlgmr.msra.gmra.mrb[0].mxu0 %v7738_v60 }
 0x1d3   : > { %6442 = vmatprep.subr.bf16.mxu1 %v7715_v59  ;;  %6060 = vmatpush1.bf16.msra.mxu0 %v7724_v41 }
 0x1d4   : > { %6062 = vmatprep.subr.bf16.mxu0 %v7732_v26  ;;  %2863 = vmatprep.mubr.f32.mxu0 %v6779_v0 }
 0x1d5   : > { %5455 = vmatmul.mubr.f32.vlgmr.msra.gmra.mrb[0].mxu1 %v7762_v3 }
 0x1d6   : > { %6444 = vmatpush1.bf16.msra.mxu1 %v7724_v41  ;;  %5541 = vmatprep.mubr.f32.mxu1 %v6779_v0 }
 0x1d7   : > { %6446 = vmatprep.subr.bf16.mxu1 %v7732_v26  ;;  %6064 = vmatpush1.bf16.msra.mxu0 %v7741_v38 }
 0x1d8   : > { %6066 = vmatprep.subr.bf16.mxu0 %v7753_v4 }
 0x1da   : > { %6448 = vmatpush1.bf16.msra.mxu1 %v7741_v38 }
 0x1db   : > { %6450 = vmatprep.subr.bf16.mxu1 %v7753_v4  ;;  %6068 = vmatpush1.bf16.msra.mxu0 %v7768_v10 }
 0x1dc   : > { %6070 = vmatprep.subr.bf16.mxu0 %v7785_v25 }
 0x1de   : > { %6452 = vmatpush1.bf16.msra.mxu1 %v7768_v10 }
 0x1df   : > { %6454 = vmatprep.subr.bf16.mxu1 %v7785_v25  ;;  %6072 = vmatpush1.bf16.msra.mxu0 %v7816_v14 }
 0x1e2   : > { %6456 = vmatpush1.bf16.msra.mxu1 %v7816_v14  ;;  %2865 = vmatmul.mubr.f32.vlgmr.msra.gmra.mrb[0].mxu0 %v7738_v60 }
 0x1e5   : > { %5543 = vmatmul.mubr.f32.vlgmr.msra.gmra.mrb[0].mxu1 %v7762_v3 }
 0x2b5   : > { %v2866_v0 = vpop.f32.mrb[0].mxu0 }
 0x2b6   : > { %2873 = vst [vmem:[%s193_s19] sm:$0xff] %v2866_v0  ;;  %v2868_v59 = vpop.f32.mrb[1].mxu0 }
 0x2b7   : > { %2874 = vst [vmem:[%s193_s19 + $0x8] sm:$0xff] %v2868_v59 }
 0x2b8   : > { %v5544_v41 = vpop.f32.mrb[0].mxu1 }
 0x2b9   : > { %5551 = vst [vmem:[%s193_s19 + $0x10] sm:$0xff] %v5544_v41  ;;  %v5546_v26 = vpop.f32.mrb[1].mxu1 }
 0x2ba   : > { %5552 = vst [vmem:[%s193_s19 + $0x18] sm:$0xff] %v5546_v26 }
 0x2bb   : > { %6698 = shalt.err (!%p6695_p5)
}
 0x2bc   : > { %s6699_s3 = scalar_lea.hbm %s7984_s7, 512  ;;  %s6703_s15 = scalar_lea.hbm %s8032_s2, 2048 }
 0x2bd   : > { %p6700_p9 = scmp.ne.s32.totalorder %s7984_s7, %s6699_s3  ;;  %p6704_p3 = scmp.lt.u32.totalorder %s7984_s7, %s8032_s2 }
 0x2be   : > { %p6705_p7 = scmp.lt.u32.totalorder %s6703_s15, %s6699_s3  ;;  %p6707_p4 = scmp.lt.u32.totalorder %s6699_s3, %s7984_s7 }
 0x2bf   : > { %p6701_p1 = pnand %p6700_p9, %p6891_p11 }
 0x2c0   : > { %p6706_p13 = por %p6705_p7, %p6704_p3 }
 0x2c1   : > { %p6702_p2 = pneg %p6701_p1 }
 0x2c2   : > { %p6708_p6 = por %p6707_p4, %p6706_p13 }
 0x2c4   : > { %p6709_p8 = pnand %p6708_p6, %p6702_p2 }
 0x2c6   : > { %6712 = shalt.err (!%p6709_p8)
}
 0x2c7   : > { %6555 = dma.vmem_to_hbm [thread:$0]  (%p6891_p11), %s7979_s21, 512, %s7984_s7, %s5554_s27  }
 0x2c8 PF: > { %p6572_p12 = scmp.ge.s32.totalorder %s6771_s14, 2  ;;  %s5582_s24 = sand.u32 1, %s6751_s9  }
 0x2c9   : > { %p8074_p10 = scmp.ne.s32.totalorder %s8052_s20, 0  ;;  %s5583_s17 = scalar_lea.sflag [#allocation4], %s5582_s24 }
 0x2cb   : > { %p6566_p0 = pnand %p6572_p12, %p8074_p10 }
 0x2cd   : > { %6746 = dma.done.wait (!%p6566_p0), %s5583_s17, 512  }
 0x2ce   : > { %6748 = vsyncadd (!%p6566_p0), %s5583_s17, 4294966784  ;;  %s19_s14 = sadd.s32 1, %s6771_s14   ;;  %s8075_s9 = smov %s6755_s10 }
 0x2cf   : > { %p16_p5 = scmp.ge.s32.totalorder %s19_s14, 6   ;;  %s8076_s10 = smov %s6759_s11 }
 0x2d0   : > { %s8077_s11 = smov %s6900_s28  ;;  %s8078_s12 = smov %s6767_s13 }
 0x2d1   : > { %s8079_s13 = smov %s8081_s25  ;;  %18 = sbr.rel (!%p16_p5) target bundleno = 7 (0x7), region = 87 }
 0x2d8   :  { %5588 = vsyncpa [#allocation3], 1 }
 0x2d9   :  { %5590 = vsyncpa [#allocation3 + $0x1], 1 }
 0x2da   :  { %5591 = vsyncpa [#allocation6], 1 }
 0x2db   :  { %5592 = vsyncpa [#allocation4], 1 }
 0x2dc   :  { %5594 = vsyncpa [#allocation4 + $0x1], 1 }

</bundles_post_ra>
